<compile_context>
chip_gen: v5e
topology: v5e:2x2
jax: 0.10.0
libtpu: 0.0.40
codegen_flags: <defaults>
</compile_context>

<pallas_src>
import functools

import jax
import jax.numpy as jnp
from jax import lax
from jax.experimental import pallas as pl
from jax.experimental.pallas import tpu as pltpu

EPS = 1e-5
LANE = 128


def _round_up(x, m):
    return (x + m - 1) // m * m


def _conv_tile(x_ref, w_ref, th, *, tile_h, wp, kh, kw, c_out_pad):
    """Conv output for one H-tile via per-tap accumulated matmuls.

    x_ref: (P2p, C_in)   zero-padded image, flattened row-major over (H+2p, W+2p)
    w_ref: (KH*KW, C_in, C_out_pad)
    Returns f32 (tile_h * wp, c_out_pad).  The last (kw-1) columns of every
    output row are junk (windows that wrap into the next padded row); callers
    mask them (stats pass) or slice them off (wrapper).
    """
    rows = tile_h * wp
    acc = jnp.zeros((rows, c_out_pad), jnp.float32)
    for dkh in range(kh):
        for dkw in range(kw):
            start = (th * tile_h + dkh) * wp + dkw
            lhs = x_ref[pl.ds(start, rows), :]                  # (rows, C_in)
            acc = acc + jnp.dot(lhs, w_ref[dkh * kw + dkw],
                                preferred_element_type=jnp.float32)
    return acc


def _stats_kernel(x_ref, w_ref, sum_ref, ssq_ref, *,
                  tile_h, wp, w_out, kh, kw, c_out_pad):
    n_i = pl.program_id(0)
    th = pl.program_id(1)

    @pl.when(jnp.logical_and(n_i == 0, th == 0))
    def _init():
        sum_ref[...] = jnp.zeros_like(sum_ref)
        ssq_ref[...] = jnp.zeros_like(ssq_ref)

    y = _conv_tile(x_ref, w_ref, th, tile_h=tile_h, wp=wp, kh=kh, kw=kw,
                   c_out_pad=c_out_pad)
    # Mask the junk columns (w_pad >= w_out) out of the BN statistics.
    col = lax.broadcasted_iota(jnp.int32, (tile_h * wp, 1), 0) % wp
    y = jnp.where(col < w_out, y, 0.0)
    sum_ref[...] += jnp.sum(y, axis=0, keepdims=True)
    ssq_ref[...] += jnp.sum(y * y, axis=0, keepdims=True)


def _apply_kernel(x_ref, w_ref, ss_ref, o_ref, *,
                  tile_h, wp, kh, kw, c_out_pad, with_nonlinearity):
    th = pl.program_id(1)
    y = _conv_tile(x_ref, w_ref, th, tile_h=tile_h, wp=wp, kh=kh, kw=kw,
                   c_out_pad=c_out_pad)
    out = y * ss_ref[0:1, :] + ss_ref[1:2, :]
    if with_nonlinearity:
        out = jnp.maximum(out, 0.0)
    o_ref[...] = out.astype(o_ref.dtype)


def conv_block_forward(x, weight, bias, gamma, beta, *,
                       padding=1, kernel_size=3, stride=1,
                       with_nonlinearity=True, tile_h=None,
                       matmul_dtype=jnp.float32):
    """x: (N, C_in, H, W) f32; weight: (C_out, C_in, KH, KW) (PyTorch OIHW)."""
    # A conv bias added before training-mode BatchNorm is exactly cancelled by
    # the mean subtraction, so it is dropped (perf feedback).
    del bias
    assert stride == 1, "this ConvBlock instance uses the default stride=1"
    n, c_in, h, w = x.shape
    c_out, wc_in, kh, kw = weight.shape
    assert wc_in == c_in and kh == kernel_size and kw == kernel_size

    h_out = h + 2 * padding - kh + 1
    w_out = w + 2 * padding - kw + 1
    wp = w + 2 * padding                       # padded width (conv over all wp cols)
    p2 = (h + 2 * padding) * wp
    p2p = _round_up(p2 + (kw - 1), 8)          # tail pad so tap windows never go OOB
    c_out_pad = _round_up(c_out, LANE)         # lane-dense output / stats

    # Pick the H tile: rows per grid step = tile_h * wp (~<= 2048 rows).
    if tile_h is None:
        budget = max(1, 2048 // wp)
        cands = [d for d in range(1, h_out + 1)
                 if h_out % d == 0 and ((d * wp) % 8 == 0 or d == h_out)]
        fits = [d for d in cands if d <= budget]
        tile_h = max(fits) if fits else min(cands)
    assert h_out % tile_h == 0
    assert (tile_h * wp) % 8 == 0 or tile_h == h_out
    n_th = h_out // tile_h

    # --- layout glue: one boundary transpose, zero-pad, flatten (no im2col) ---
    x_nhwc = jnp.transpose(x, (0, 2, 3, 1))
    x_pad = jnp.pad(x_nhwc,
                    ((0, 0), (padding, padding), (padding, padding), (0, 0)))
    x_flat = x_pad.reshape(n, p2, c_in)
    x_flat = jnp.pad(x_flat, ((0, 0), (0, p2p - p2), (0, 0))).astype(matmul_dtype)

    # weights: OIHW -> (KH*KW, C_in, C_out_pad), taps in (kh, kw) row-major order.
    w_taps = jnp.transpose(weight, (2, 3, 1, 0)).reshape(kh * kw, c_in, c_out)
    w_taps = jnp.pad(w_taps,
                     ((0, 0), (0, 0), (0, c_out_pad - c_out))).astype(matmul_dtype)

    grid = (n, n_th)
    x_spec = pl.BlockSpec((None, p2p, c_in), lambda ni, ti: (ni, 0, 0))
    w_spec = pl.BlockSpec((kh * kw, c_in, c_out_pad), lambda ni, ti: (0, 0, 0))
    stat_spec = pl.BlockSpec((1, c_out_pad), lambda ni, ti: (0, 0))
    vmem_cap = 48 * 1024 * 1024  # headroom under v7x 64 MiB physical VMEM
    cparams_seq = pltpu.CompilerParams(
        dimension_semantics=("arbitrary", "arbitrary"),
        vmem_limit_bytes=vmem_cap)
    cparams_par = pltpu.CompilerParams(
        dimension_semantics=("parallel", "parallel"),
        vmem_limit_bytes=vmem_cap)

    # --- pass 1: conv + per-channel sum / sum-of-squares ----------------------
    stats_kern = functools.partial(
        _stats_kernel, tile_h=tile_h, wp=wp, w_out=w_out, kh=kh, kw=kw,
        c_out_pad=c_out_pad)
    ch_sum, ch_ssq = pl.pallas_call(
        stats_kern,
        grid=grid,
        in_specs=[x_spec, w_spec],
        out_specs=[stat_spec, stat_spec],
        out_shape=[jax.ShapeDtypeStruct((1, c_out_pad), jnp.float32),
                   jax.ShapeDtypeStruct((1, c_out_pad), jnp.float32)],
        compiler_params=cparams_seq,
    )(x_flat, w_taps)

    # --- fold BN affine into a single scale/shift (tiny, plain JAX) -----------
    cnt = jnp.float32(n * h_out * w_out)
    mean = ch_sum / cnt
    var = jnp.maximum(ch_ssq / cnt - mean * mean, 0.0)       # biased, one-pass
    g = jnp.pad(gamma.astype(jnp.float32),
                (0, c_out_pad - c_out)).reshape(1, c_out_pad)
    b = jnp.pad(beta.astype(jnp.float32),
                (0, c_out_pad - c_out)).reshape(1, c_out_pad)
    scale = g * lax.rsqrt(var + EPS)
    shift = b - mean * scale
    scale_shift = jnp.concatenate([scale, shift], axis=0)    # (2, C_out_pad)

    # --- pass 2: recompute conv tile, apply scale/shift (+ ReLU) --------------
    apply_kern = functools.partial(
        _apply_kernel, tile_h=tile_h, wp=wp, kh=kh, kw=kw,
        c_out_pad=c_out_pad, with_nonlinearity=with_nonlinearity)
    out_flat = pl.pallas_call(
        apply_kern,
        grid=grid,
        in_specs=[x_spec, w_spec,
                  pl.BlockSpec((2, c_out_pad), lambda ni, ti: (0, 0))],
        out_specs=pl.BlockSpec((None, tile_h * wp, c_out_pad),
                               lambda ni, ti: (ni, ti, 0)),
        out_shape=jax.ShapeDtypeStruct((n, h_out * wp, c_out_pad), jnp.float32),
        compiler_params=cparams_par,
    )(x_flat, w_taps, scale_shift)

    # Drop junk columns / padded channels, single boundary transpose to NCHW.
    out = out_flat.reshape(n, h_out, wp, c_out_pad)[:, :, :w_out, :c_out]
    return jnp.transpose(out, (0, 3, 1, 2))


def _reference(x, weight, bias, gamma, beta, with_nonlinearity=True):
    """Pure-JAX reference matching PyTorch ConvBlock.forward (training-mode BN)."""
    y = lax.conv_general_dilated(
        x, weight, window_strides=(1, 1), padding=((1, 1), (1, 1)),
        dimension_numbers=("NCHW", "OIHW", "NCHW"))
    y = y + bias[None, :, None, None]
    mean = jnp.mean(y, axis=(0, 2, 3), keepdims=True)
    var = jnp.mean((y - mean) ** 2, axis=(0, 2, 3), keepdims=True)
    y = (y - mean) * lax.rsqrt(var + EPS)
    y = y * gamma[None, :, None, None] + beta[None, :, None, None]
    if with_nonlinearity:
        y = jnp.maximum(y, 0.0)
    return y


if __name__ == "__main__":
    key = jax.random.PRNGKey(0)
    kx, kw_, kb = jax.random.split(key, 3)

    N, C_IN, C_OUT, H, W = 2, 4, 8, 16, 16
    KSIZE = 3

    x = jax.random.normal(kx, (N, C_IN, H, W), dtype=jnp.float32)

    # Deterministic PyTorch-style init: conv weight/bias ~ U(-bound, bound),
    # bound = 1/sqrt(fan_in); BN gamma=1, beta=0.
    fan_in = C_IN * KSIZE * KSIZE
    bound = 1.0 / jnp.sqrt(jnp.float32(fan_in))
    weight = jax.random.uniform(kw_, (C_OUT, C_IN, KSIZE, KSIZE),
                                minval=-bound, maxval=bound, dtype=jnp.float32)
    bias = jax.random.uniform(kb, (C_OUT,), minval=-bound, maxval=bound,
                              dtype=jnp.float32)
    gamma = jnp.ones((C_OUT,), dtype=jnp.float32)
    beta = jnp.zeros((C_OUT,), dtype=jnp.float32)

    ref = _reference(x, weight, bias, gamma, beta, with_nonlinearity=True)

    # f32 matmul path (tight tolerance); tile_h=8 exercises multi-tile BN stats.
    out = conv_block_forward(x, weight, bias, gamma, beta,
                             with_nonlinearity=True, tile_h=8,
                             matmul_dtype=jnp.float32)
    out = jax.block_until_ready(out)
    assert out.shape == (N, C_OUT, H, W)
    err = float(jnp.max(jnp.abs(out - ref)))
    assert jnp.allclose(out, ref, rtol=1e-4, atol=1e-4), f"f32 max abs err = {err}"

    # bf16 matmul path (v6e/v7x HBM/MXU lever); f32 accumulation + f32 BN math.
    out_bf16 = conv_block_forward(x, weight, bias, gamma, beta,
                                  with_nonlinearity=True,
                                  matmul_dtype=jnp.bfloat16)
    out_bf16 = jax.block_until_ready(out_bf16)
    err_bf16 = float(jnp.max(jnp.abs(out_bf16 - ref)))
    assert jnp.allclose(out_bf16, ref, rtol=2e-2, atol=2e-2), \
        f"bf16 max abs err = {err_bf16}"

    print("KERNEL_OK")
</pallas_src>

<mosaic_0001>
module attributes {stable_mosaic.version = 11 : i64} {
  func.func @_stats_kernel(%arg0: i32, %arg1: i32, %arg2: memref<1x328x4xf32, #tpu.memory_space<vmem>>, %arg3: memref<9x4x128xf32, #tpu.memory_space<vmem>>, %arg4: memref<1x128xf32, #tpu.memory_space<vmem>>, %arg5: memref<1x128xf32, #tpu.memory_space<vmem>>) attributes {dimension_semantics = [#tpu.dimension_semantics<arbitrary>, #tpu.dimension_semantics<arbitrary>], iteration_bounds = array<i64: 2, 2>, scalar_prefetch = 0 : i64, scratch_operands = 0 : i64, tpu.core_type = #tpu.core_type<tc>, window_params = [{transform_indices = @transform_0, window_bounds = array<i64: 1, 328, 4>}, {pipeline_mode = #tpu.pipeline_mode<synchronous>, transform_indices = @transform_1, window_bounds = array<i64: 9, 4, 128>}, {pipeline_mode = #tpu.pipeline_mode<synchronous>, transform_indices = @transform_2, window_bounds = array<i64: 1, 128>}, {pipeline_mode = #tpu.pipeline_mode<synchronous>, transform_indices = @transform_3, window_bounds = array<i64: 1, 128>}]} {
    %c0_i32 = arith.constant 0 : i32
    %0 = arith.cmpi eq, %arg0, %c0_i32 : i32
    %c0_i32_0 = arith.constant 0 : i32
    %1 = arith.cmpi eq, %arg1, %c0_i32_0 : i32
    %2 = arith.andi %0, %1 : i1
    %3 = arith.extui %2 : i1 to i32
    %c0_i32_1 = arith.constant 0 : i32
    %4 = arith.cmpi ne, %3, %c0_i32_1 : i32
    scf.if %4 {
      %cst_96 = arith.constant 0.000000e+00 : f32
      %139 = vector.broadcast %cst_96 : f32 to vector<1x128xf32>
      %c0_97 = arith.constant 0 : index
      %c0_98 = arith.constant 0 : index
      %140 = vector.load %arg4[%c0_97, %c0_98] : memref<1x128xf32, #tpu.memory_space<vmem>>, vector<1x128xf32>
      tpu.vector_store %arg4[%c0_97, %c0_98], %139 {strides = array<i32>} : memref<1x128xf32, #tpu.memory_space<vmem>>, vector<1x128xf32>,
      %cst_99 = arith.constant 0.000000e+00 : f32
      %141 = vector.broadcast %cst_99 : f32 to vector<1x128xf32>
      %c0_100 = arith.constant 0 : index
      %c0_101 = arith.constant 0 : index
      %142 = vector.load %arg5[%c0_100, %c0_101] : memref<1x128xf32, #tpu.memory_space<vmem>>, vector<1x128xf32>
      tpu.vector_store %arg5[%c0_100, %c0_101], %141 {strides = array<i32>} : memref<1x128xf32, #tpu.memory_space<vmem>>, vector<1x128xf32>,
    } else {
    }
    %cst = arith.constant 0.000000e+00 : f32
    %5 = vector.broadcast %cst : f32 to vector<144x128xf32>
    %c8_i32 = arith.constant 8 : i32
    %6 = arith.muli %arg1, %c8_i32 : i32
    %c0_i32_2 = arith.constant 0 : i32
    %7 = arith.addi %6, %c0_i32_2 : i32
    %c18_i32 = arith.constant 18 : i32
    %8 = arith.muli %7, %c18_i32 : i32
    %c0_i32_3 = arith.constant 0 : i32
    %9 = arith.addi %8, %c0_i32_3 : i32
    %c0 = arith.constant 0 : index
    %10 = arith.index_cast %9 : i32 to index
    %c0_4 = arith.constant 0 : index
    %11 = vector.load %arg2[%c0, %10, %c0_4] : memref<1x328x4xf32, #tpu.memory_space<vmem>>, vector<1x144x4xf32>
    %12 = vector.shape_cast %11 : vector<1x144x4xf32> to vector<144x4xf32>
    %c0_5 = arith.constant 0 : index
    %c0_6 = arith.constant 0 : index
    %c0_7 = arith.constant 0 : index
    %13 = vector.load %arg3[%c0_5, %c0_6, %c0_7] : memref<9x4x128xf32, #tpu.memory_space<vmem>>, vector<1x4x128xf32>
    %14 = vector.shape_cast %13 : vector<1x4x128xf32> to vector<4x128xf32>
    %cst_8 = arith.constant dense<0.000000e+00> : vector<144x128xf32>
    %15 = tpu.matmul %12, %14, %cst_8 {dimension_numbers = #tpu.dot_dimension_numbers<[1], [0], [0], [1], [0, 0, 1, 1], [], []>} : vector<144x4xf32>, vector<4x128xf32>, vector<144x128xf32> -> vector<144x128xf32>
    %16 = arith.addf %5, %15 : vector<144x128xf32>
    %c8_i32_9 = arith.constant 8 : i32
    %17 = arith.muli %arg1, %c8_i32_9 : i32
    %c0_i32_10 = arith.constant 0 : i32
    %18 = arith.addi %17, %c0_i32_10 : i32
    %c18_i32_11 = arith.constant 18 : i32
    %19 = arith.muli %18, %c18_i32_11 : i32
    %c1_i32 = arith.constant 1 : i32
    %20 = arith.addi %19, %c1_i32 : i32
    %c0_12 = arith.constant 0 : index
    %21 = arith.index_cast %20 : i32 to index
    %c0_13 = arith.constant 0 : index
    %22 = vector.load %arg2[%c0_12, %21, %c0_13] : memref<1x328x4xf32, #tpu.memory_space<vmem>>, vector<1x144x4xf32>
    %23 = vector.shape_cast %22 : vector<1x144x4xf32> to vector<144x4xf32>
    %c1 = arith.constant 1 : index
    %c0_14 = arith.constant 0 : index
    %c0_15 = arith.constant 0 : index
    %24 = vector.load %arg3[%c1, %c0_14, %c0_15] : memref<9x4x128xf32, #tpu.memory_space<vmem>>, vector<1x4x128xf32>
    %25 = vector.shape_cast %24 : vector<1x4x128xf32> to vector<4x128xf32>
    %cst_16 = arith.constant dense<0.000000e+00> : vector<144x128xf32>
    %26 = tpu.matmul %23, %25, %cst_16 {dimension_numbers = #tpu.dot_dimension_numbers<[1], [0], [0], [1], [0, 0, 1, 1], [], []>} : vector<144x4xf32>, vector<4x128xf32>, vector<144x128xf32> -> vector<144x128xf32>
    %27 = arith.addf %16, %26 : vector<144x128xf32>
    %c8_i32_17 = arith.constant 8 : i32
    %28 = arith.muli %arg1, %c8_i32_17 : i32
    %c0_i32_18 = arith.constant 0 : i32
    %29 = arith.addi %28, %c0_i32_18 : i32
    %c18_i32_19 = arith.constant 18 : i32
    %30 = arith.muli %29, %c18_i32_19 : i32
    %c2_i32 = arith.constant 2 : i32
    %31 = arith.addi %30, %c2_i32 : i32
    %c0_20 = arith.constant 0 : index
    %32 = arith.index_cast %31 : i32 to index
    %c0_21 = arith.constant 0 : index
    %33 = vector.load %arg2[%c0_20, %32, %c0_21] : memref<1x328x4xf32, #tpu.memory_space<vmem>>, vector<1x144x4xf32>
    %34 = vector.shape_cast %33 : vector<1x144x4xf32> to vector<144x4xf32>
    %c2 = arith.constant 2 : index
    %c0_22 = arith.constant 0 : index
    %c0_23 = arith.constant 0 : index
    %35 = vector.load %arg3[%c2, %c0_22, %c0_23] : memref<9x4x128xf32, #tpu.memory_space<vmem>>, vector<1x4x128xf32>
    %36 = vector.shape_cast %35 : vector<1x4x128xf32> to vector<4x128xf32>
    %cst_24 = arith.constant dense<0.000000e+00> : vector<144x128xf32>
    %37 = tpu.matmul %34, %36, %cst_24 {dimension_numbers = #tpu.dot_dimension_numbers<[1], [0], [0], [1], [0, 0, 1, 1], [], []>} : vector<144x4xf32>, vector<4x128xf32>, vector<144x128xf32> -> vector<144x128xf32>
    %38 = arith.addf %27, %37 : vector<144x128xf32>
    %c8_i32_25 = arith.constant 8 : i32
    %39 = arith.muli %arg1, %c8_i32_25 : i32
    %c1_i32_26 = arith.constant 1 : i32
    %40 = arith.addi %39, %c1_i32_26 : i32
    %c18_i32_27 = arith.constant 18 : i32
    %41 = arith.muli %40, %c18_i32_27 : i32
    %c0_i32_28 = arith.constant 0 : i32
    %42 = arith.addi %41, %c0_i32_28 : i32
    %c0_29 = arith.constant 0 : index
    %43 = arith.index_cast %42 : i32 to index
    %c0_30 = arith.constant 0 : index
    %44 = vector.load %arg2[%c0_29, %43, %c0_30] : memref<1x328x4xf32, #tpu.memory_space<vmem>>, vector<1x144x4xf32>
    %45 = vector.shape_cast %44 : vector<1x144x4xf32> to vector<144x4xf32>
    %c3 = arith.constant 3 : index
    %c0_31 = arith.constant 0 : index
    %c0_32 = arith.constant 0 : index
    %46 = vector.load %arg3[%c3, %c0_31, %c0_32] : memref<9x4x128xf32, #tpu.memory_space<vmem>>, vector<1x4x128xf32>
    %47 = vector.shape_cast %46 : vector<1x4x128xf32> to vector<4x128xf32>
    %cst_33 = arith.constant dense<0.000000e+00> : vector<144x128xf32>
    %48 = tpu.matmul %45, %47, %cst_33 {dimension_numbers = #tpu.dot_dimension_numbers<[1], [0], [0], [1], [0, 0, 1, 1], [], []>} : vector<144x4xf32>, vector<4x128xf32>, vector<144x128xf32> -> vector<144x128xf32>
    %49 = arith.addf %38, %48 : vector<144x128xf32>
    %c8_i32_34 = arith.constant 8 : i32
    %50 = arith.muli %arg1, %c8_i32_34 : i32
    %c1_i32_35 = arith.constant 1 : i32
    %51 = arith.addi %50, %c1_i32_35 : i32
    %c18_i32_36 = arith.constant 18 : i32
    %52 = arith.muli %51, %c18_i32_36 : i32
    %c1_i32_37 = arith.constant 1 : i32
    %53 = arith.addi %52, %c1_i32_37 : i32
    %c0_38 = arith.constant 0 : index
    %54 = arith.index_cast %53 : i32 to index
    %c0_39 = arith.constant 0 : index
    %55 = vector.load %arg2[%c0_38, %54, %c0_39] : memref<1x328x4xf32, #tpu.memory_space<vmem>>, vector<1x144x4xf32>
    %56 = vector.shape_cast %55 : vector<1x144x4xf32> to vector<144x4xf32>
    %c4 = arith.constant 4 : index
    %c0_40 = arith.constant 0 : index
    %c0_41 = arith.constant 0 : index
    %57 = vector.load %arg3[%c4, %c0_40, %c0_41] : memref<9x4x128xf32, #tpu.memory_space<vmem>>, vector<1x4x128xf32>
    %58 = vector.shape_cast %57 : vector<1x4x128xf32> to vector<4x128xf32>
    %cst_42 = arith.constant dense<0.000000e+00> : vector<144x128xf32>
    %59 = tpu.matmul %56, %58, %cst_42 {dimension_numbers = #tpu.dot_dimension_numbers<[1], [0], [0], [1], [0, 0, 1, 1], [], []>} : vector<144x4xf32>, vector<4x128xf32>, vector<144x128xf32> -> vector<144x128xf32>
    %60 = arith.addf %49, %59 : vector<144x128xf32>
    %c8_i32_43 = arith.constant 8 : i32
    %61 = arith.muli %arg1, %c8_i32_43 : i32
    %c1_i32_44 = arith.constant 1 : i32
    %62 = arith.addi %61, %c1_i32_44 : i32
    %c18_i32_45 = arith.constant 18 : i32
    %63 = arith.muli %62, %c18_i32_45 : i32
    %c2_i32_46 = arith.constant 2 : i32
    %64 = arith.addi %63, %c2_i32_46 : i32
    %c0_47 = arith.constant 0 : index
    %65 = arith.index_cast %64 : i32 to index
    %c0_48 = arith.constant 0 : index
    %66 = vector.load %arg2[%c0_47, %65, %c0_48] : memref<1x328x4xf32, #tpu.memory_space<vmem>>, vector<1x144x4xf32>
    %67 = vector.shape_cast %66 : vector<1x144x4xf32> to vector<144x4xf32>
    %c5 = arith.constant 5 : index
    %c0_49 = arith.constant 0 : index
    %c0_50 = arith.constant 0 : index
    %68 = vector.load %arg3[%c5, %c0_49, %c0_50] : memref<9x4x128xf32, #tpu.memory_space<vmem>>, vector<1x4x128xf32>
    %69 = vector.shape_cast %68 : vector<1x4x128xf32> to vector<4x128xf32>
    %cst_51 = arith.constant dense<0.000000e+00> : vector<144x128xf32>
    %70 = tpu.matmul %67, %69, %cst_51 {dimension_numbers = #tpu.dot_dimension_numbers<[1], [0], [0], [1], [0, 0, 1, 1], [], []>} : vector<144x4xf32>, vector<4x128xf32>, vector<144x128xf32> -> vector<144x128xf32>
    %71 = arith.addf %60, %70 : vector<144x128xf32>
    %c8_i32_52 = arith.constant 8 : i32
    %72 = arith.muli %arg1, %c8_i32_52 : i32
    %c2_i32_53 = arith.constant 2 : i32
    %73 = arith.addi %72, %c2_i32_53 : i32
    %c18_i32_54 = arith.constant 18 : i32
    %74 = arith.muli %73, %c18_i32_54 : i32
    %c0_i32_55 = arith.constant 0 : i32
    %75 = arith.addi %74, %c0_i32_55 : i32
    %c0_56 = arith.constant 0 : index
    %76 = arith.index_cast %75 : i32 to index
    %c0_57 = arith.constant 0 : index
    %77 = vector.load %arg2[%c0_56, %76, %c0_57] : memref<1x328x4xf32, #tpu.memory_space<vmem>>, vector<1x144x4xf32>
    %78 = vector.shape_cast %77 : vector<1x144x4xf32> to vector<144x4xf32>
    %c6 = arith.constant 6 : index
    %c0_58 = arith.constant 0 : index
    %c0_59 = arith.constant 0 : index
    %79 = vector.load %arg3[%c6, %c0_58, %c0_59] : memref<9x4x128xf32, #tpu.memory_space<vmem>>, vector<1x4x128xf32>
    %80 = vector.shape_cast %79 : vector<1x4x128xf32> to vector<4x128xf32>
    %cst_60 = arith.constant dense<0.000000e+00> : vector<144x128xf32>
    %81 = tpu.matmul %78, %80, %cst_60 {dimension_numbers = #tpu.dot_dimension_numbers<[1], [0], [0], [1], [0, 0, 1, 1], [], []>} : vector<144x4xf32>, vector<4x128xf32>, vector<144x128xf32> -> vector<144x128xf32>
    %82 = arith.addf %71, %81 : vector<144x128xf32>
    %c8_i32_61 = arith.constant 8 : i32
    %83 = arith.muli %arg1, %c8_i32_61 : i32
    %c2_i32_62 = arith.constant 2 : i32
    %84 = arith.addi %83, %c2_i32_62 : i32
    %c18_i32_63 = arith.constant 18 : i32
    %85 = arith.muli %84, %c18_i32_63 : i32
    %c1_i32_64 = arith.constant 1 : i32
    %86 = arith.addi %85, %c1_i32_64 : i32
    %c0_65 = arith.constant 0 : index
    %87 = arith.index_cast %86 : i32 to index
    %c0_66 = arith.constant 0 : index
    %88 = vector.load %arg2[%c0_65, %87, %c0_66] : memref<1x328x4xf32, #tpu.memory_space<vmem>>, vector<1x144x4xf32>
    %89 = vector.shape_cast %88 : vector<1x144x4xf32> to vector<144x4xf32>
    %c7 = arith.constant 7 : index
    %c0_67 = arith.constant 0 : index
    %c0_68 = arith.constant 0 : index
    %90 = vector.load %arg3[%c7, %c0_67, %c0_68] : memref<9x4x128xf32, #tpu.memory_space<vmem>>, vector<1x4x128xf32>
    %91 = vector.shape_cast %90 : vector<1x4x128xf32> to vector<4x128xf32>
    %cst_69 = arith.constant dense<0.000000e+00> : vector<144x128xf32>
    %92 = tpu.matmul %89, %91, %cst_69 {dimension_numbers = #tpu.dot_dimension_numbers<[1], [0], [0], [1], [0, 0, 1, 1], [], []>} : vector<144x4xf32>, vector<4x128xf32>, vector<144x128xf32> -> vector<144x128xf32>
    %93 = arith.addf %82, %92 : vector<144x128xf32>
    %c8_i32_70 = arith.constant 8 : i32
    %94 = arith.muli %arg1, %c8_i32_70 : i32
    %c2_i32_71 = arith.constant 2 : i32
    %95 = arith.addi %94, %c2_i32_71 : i32
    %c18_i32_72 = arith.constant 18 : i32
    %96 = arith.muli %95, %c18_i32_72 : i32
    %c2_i32_73 = arith.constant 2 : i32
    %97 = arith.addi %96, %c2_i32_73 : i32
    %c0_74 = arith.constant 0 : index
    %98 = arith.index_cast %97 : i32 to index
    %c0_75 = arith.constant 0 : index
    %99 = vector.load %arg2[%c0_74, %98, %c0_75] : memref<1x328x4xf32, #tpu.memory_space<vmem>>, vector<1x144x4xf32>
    %100 = vector.shape_cast %99 : vector<1x144x4xf32> to vector<144x4xf32>
    %c8 = arith.constant 8 : index
    %c0_76 = arith.constant 0 : index
    %c0_77 = arith.constant 0 : index
    %101 = vector.load %arg3[%c8, %c0_76, %c0_77] : memref<9x4x128xf32, #tpu.memory_space<vmem>>, vector<1x4x128xf32>
    %102 = vector.shape_cast %101 : vector<1x4x128xf32> to vector<4x128xf32>
    %cst_78 = arith.constant dense<0.000000e+00> : vector<144x128xf32>
    %103 = tpu.matmul %100, %102, %cst_78 {dimension_numbers = #tpu.dot_dimension_numbers<[1], [0], [0], [1], [0, 0, 1, 1], [], []>} : vector<144x4xf32>, vector<4x128xf32>, vector<144x128xf32> -> vector<144x128xf32>
    %104 = arith.addf %93, %103 : vector<144x128xf32>
    %105 = tpu.iota {dimensions = array<i32: 0>} : vector<144x1xi32>
    %c18_i32_79 = arith.constant 18 : i32
    %c0_i32_80 = arith.constant 0 : i32
    %106 = arith.cmpi eq, %c18_i32_79, %c0_i32_80 : i32
    %c1_i32_81 = arith.constant 1 : i32
    %107 = arith.select %106, %c1_i32_81, %c18_i32_79 : i32
    %108 = vector.broadcast %107 : i32 to vector<144x1xi32>
    %109 = arith.remsi %105, %108 : vector<144x1xi32>
    %c0_i32_82 = arith.constant 0 : i32
    %110 = vector.broadcast %c0_i32_82 : i32 to vector<144x1xi32>
    %111 = arith.cmpi ne, %109, %110 : vector<144x1xi32>
    %c0_i32_83 = arith.constant 0 : i32
    %112 = vector.broadcast %c0_i32_83 : i32 to vector<144x1xi32>
    %113 = arith.cmpi slt, %109, %112 : vector<144x1xi32>
    %c0_i32_84 = arith.constant 0 : i32
    %114 = arith.cmpi slt, %107, %c0_i32_84 : i32
    %115 = vector.broadcast %114 : i1 to vector<144x1xi1>
    %116 = vector.broadcast %115 : vector<144x1xi1> to vector<144x1xi1>
    %117 = arith.xori %113, %116 : vector<144x1xi1>
    %118 = arith.andi %117, %111 : vector<144x1xi1>
    %119 = vector.broadcast %107 : i32 to vector<144x1xi32>
    %120 = arith.addi %109, %119 : vector<144x1xi32>
    %121 = arith.select %118, %120, %109 : vector<144x1xi1>, vector<144x1xi32>
    %c16_i32 = arith.constant 16 : i32
    %122 = vector.broadcast %c16_i32 : i32 to vector<144x1xi32>
    %123 = arith.cmpi slt, %121, %122 : vector<144x1xi32>
    %cst_85 = arith.constant 0.000000e+00 : f32
    %124 = vector.shape_cast %123 : vector<144x1xi1> to vector<144x1xi1>
    %125 = vector.broadcast %124 : vector<144x1xi1> to vector<144x128xi1>
    %126 = vector.broadcast %cst_85 : f32 to vector<144x128xf32>
    %127 = arith.select %125, %104, %126 : vector<144x128xi1>, vector<144x128xf32>
    %c0_86 = arith.constant 0 : index
    %c0_87 = arith.constant 0 : index
    %128 = vector.load %arg4[%c0_86, %c0_87] : memref<1x128xf32, #tpu.memory_space<vmem>>, vector<1x128xf32>
    %cst_88 = arith.constant dense<0.000000e+00> : vector<128xf32>
    %129 = vector.multi_reduction <add>, %127, %cst_88 [0] : vector<144x128xf32> to vector<128xf32>
    %130 = vector.shape_cast %129 : vector<128xf32> to vector<1x128xf32>
    %131 = arith.addf %128, %130 : vector<1x128xf32>
    %c0_89 = arith.constant 0 : index
    %c0_90 = arith.constant 0 : index
    %132 = vector.load %arg4[%c0_89, %c0_90] : memref<1x128xf32, #tpu.memory_space<vmem>>, vector<1x128xf32>
    tpu.vector_store %arg4[%c0_89, %c0_90], %131 {strides = array<i32>} : memref<1x128xf32, #tpu.memory_space<vmem>>, vector<1x128xf32>,
    %c0_91 = arith.constant 0 : index
    %c0_92 = arith.constant 0 : index
    %133 = vector.load %arg5[%c0_91, %c0_92] : memref<1x128xf32, #tpu.memory_space<vmem>>, vector<1x128xf32>
    %134 = arith.mulf %127, %127 : vector<144x128xf32>
    %cst_93 = arith.constant dense<0.000000e+00> : vector<128xf32>
    %135 = vector.multi_reduction <add>, %134, %cst_93 [0] : vector<144x128xf32> to vector<128xf32>
    %136 = vector.shape_cast %135 : vector<128xf32> to vector<1x128xf32>
    %137 = arith.addf %133, %136 : vector<1x128xf32>
    %c0_94 = arith.constant 0 : index
    %c0_95 = arith.constant 0 : index
    %138 = vector.load %arg5[%c0_94, %c0_95] : memref<1x128xf32, #tpu.memory_space<vmem>>, vector<1x128xf32>
    tpu.vector_store %arg5[%c0_94, %c0_95], %137 {strides = array<i32>} : memref<1x128xf32, #tpu.memory_space<vmem>>, vector<1x128xf32>,
    return
  }
  func.func @transform_0(%arg0: i32, %arg1: i32) -> (i32, i32, i32) {
    %c0_i32 = arith.constant 0 : i32
    %c0_i32_0 = arith.constant 0 : i32
    %c0_i32_1 = arith.constant 0 : i32
    return %arg0, %c0_i32, %c0_i32_0 : i32, i32, i32
  }
  func.func @transform_1(%arg0: i32, %arg1: i32) -> (i32, i32, i32) {
    %c0_i32 = arith.constant 0 : i32
    %c0_i32_0 = arith.constant 0 : i32
    %c0_i32_1 = arith.constant 0 : i32
    %c0_i32_2 = arith.constant 0 : i32
    return %c0_i32, %c0_i32_0, %c0_i32_1 : i32, i32, i32
  }
  func.func @transform_2(%arg0: i32, %arg1: i32) -> (i32, i32) {
    %c0_i32 = arith.constant 0 : i32
    %c0_i32_0 = arith.constant 0 : i32
    %c0_i32_1 = arith.constant 0 : i32
    return %c0_i32, %c0_i32_0 : i32, i32
  }
  func.func @transform_3(%arg0: i32, %arg1: i32) -> (i32, i32) {
    %c0_i32 = arith.constant 0 : i32
    %c0_i32_0 = arith.constant 0 : i32
    %c0_i32_1 = arith.constant 0 : i32
    return %c0_i32, %c0_i32_0 : i32, i32
  }
}

</mosaic_0001>

<bundles_post_ra>
// kernel: tpu_custom_call.1
= control target key start
LH: loop header
LB: loop body
LE: loop exit
PB: predicated region body
PF: predicated region fallthrough
CT: control target
= control target key end

     0   :  { %9 = vsyncpa [#allocation3], 0  ;;  %s4203_s0 = inlined_call_operand.vmem [shape: f32[2,328,4], index: 0, kind: input, shape index: {}]   ;;  %s4204_s1 = inlined_call_operand.vmem [shape: f32[9,4,128], index: 1, kind: input, shape index: {}]   ;;  %s4205_s2 = inlined_call_operand.hbm [shape: f32[1,128], index: 2, kind: output, shape index: {0}]   ;;  %s4206_s3 = inlined_call_operand.hbm [shape: f32[1,128], index: 3, kind: output, shape index: {1}]  }
   0x1   :  { %10 = vsyncpa [#allocation5], 0  ;;  %s3079_s12 = smov 0   ;;  %s3081_s13 = smov 0  }
   0x2   :  { %s3083_s14 = smov 0   ;;  %s3085_s15 = smov 0  }
   0x3   :  { %s3087_s16 = smov 0  }
   0x4 LB: > { %s2545_s17 = sadd.s32 4294967295, %s3053_s16   ;;  %s25_s18 = sadd.s32 1, %s3045_s14  ;;  %s3053_s16 = sphi %s3087_s16, %s16_s16   ;;  %s3049_s15 = sphi %s3085_s15, %s4269_s15   ;;  %s3045_s14 = sphi %s3083_s14, %s4268_s14   ;;  %s3041_s13 = sphi %s3081_s13, %s4267_s13   ;;  %s3037_s12 = sphi %s3079_s12, %s4266_s12  }
   0x5   : > { %p26_p0 = scmp.ge.s32.totalorder %s25_s18, 2  ;;  %s28_s19 = sadd.s32 1, %s3049_s15 }
   0x6   : > { %p2548_p1 = scmp.ge.s32.totalorder %s3053_s16, 1  ;;  %p144_p2 = scmp.lt.s32.totalorder %s3053_s16, 5 }
   0x7   : > { %s4271_s18 = smov (%p26_p0, %s25_s18), 0  ;;  %s4273_s19 = smov (!%p26_p0, %s28_s19), %s3049_s15 }
   0x8   : > { %p145_p3 = pnand %p2548_p1, %p144_p2  ;;  %p30_p4 = scmp.ge.s32.totalorder %s4273_s19, 2 }
   0x9   : > { %p163_p5 = scmp.lt.s32.totalorder (!%p145_p3), %s3041_s13, 1  ;;  %p168_p6 = scmp.eq.s32.totalorder (!%p145_p3), %s3041_s13, 0 }
   0xa   : > { %s4275_s19 = smov (%p30_p4, %s4273_s19), 0  ;;  %148 = sbr.rel (%p145_p3) target bundleno = 510 (0x1fe), region = 28 }
   0xb   : > { %p169_p7 = scmp.eq.s32.totalorder (!%p145_p3), %s3037_s12, 0 }
   0xd   : > { %p170_p8 = pnand (!%p145_p3), %p169_p7, %p168_p6 }
   0xf   : > { %s4277_s13 = smov (!%p163_p5, %s3041_s13), 1  ;;  %173 = sbr.rel (%p170_p8) target bundleno = 23 (0x17), region = 32 }
  0x10   : > { %s2894_s20 = smul.u32 328, %s4277_s13 }
  0x12   : > { %s167_s23 = scalar_lea.vmem %s4203_s0, %s2894_s20 }
  0x14   : > { %v3055_v0 = vmov 0.0  }
  0x15   : > { %174 = vst [vmem:[#allocation2] sm:$0x1] %v3055_v0 }
  0x16   : > { %175 = vst [vmem:[#allocation4] sm:$0x1] %v3055_v0 }
  0x17 PF: > { %v2568_v1 = vld [vmem:[%s4204_s1 + $0x4] sm:$0xf]  ;;  %vm274_vm0 = vcmask 1043456   ;;  %s176_s26 = smul.u32 144, %s3037_s12  ;;  %vm219_vm1 = vcmask 31744   ;;  %s2437_s27 = sshll.u32 %s4205_s2, 4  ;;  %s2438_s27 = int_to_ptr.hbm [resolvable:$true] %s2437_s27 }
  0x18   : > { %2891 = vmatpush.msk.msra.mxu1 %vm274_vm0, %v2568_v1  ;;  %2892 = vmatpush.msk.msra.mxu2 %vm274_vm0, %v2568_v1  ;;  %v2625_v2 = vld [vmem:[%s4204_s1 + $0x8] sm:$0xf]  ;;  %v196_v3 = vld [vmem:[%s4204_s1] sm:$0xf]  ;;  %v2665_v4 = vld [vmem:[%s4204_s1 + $0xc] sm:$0xf] }
  0x19   : > { %s3128_s4 = scalar_lea.vmem %s167_s23, %s176_s26  ;;  %2569 = vmatpush.msk.msra.mxu0 %vm274_vm0, %v2568_v1  ;;  %v2705_v7 = vld [vmem:[%s4204_s1 + $0x10] sm:$0xf]  ;;  %2893 = vmatpush.msk.msra.mxu3 %vm274_vm0, %v2568_v1  ;;  %v2785_v14 = vld [vmem:[%s4204_s1 + $0x18] sm:$0xf]  ;;  %v2825_v15 = vld [vmem:[%s4204_s1 + $0x1c] sm:$0xf] }
  0x1a   : > { %2626 = vmatpush.msk.msrb.mxu2 %vm274_vm0, %v2625_v2  ;;  %2588 = vmatpush.msk.msrb.mxu1 %vm274_vm0, %v196_v3  ;;  %v2555_v5 = vld [vmem:[%s3128_s4 + $0x29] sm:$0xff]  ;;  %v2560_v6 = vld [vmem:[%s3128_s4 + $0x51] sm:$0xff]  ;;  %v2550_v8 = vld [vmem:[%s3128_s4 + $0x1] sm:$0xff]  ;;  %s3057_s23 = smov [#allocation2]   ;;  %p4169_p9 = scmp.eq.s32.totalorder %s2545_s17, 3 }
  0x1b   : > { %2575 = vmatmul.msk.f32.vlgmr.msra.gmra.mxu1 %vm219_vm1, %v2555_v5  ;;  %2580 = vmatmul.msk.f32.vlgmr.msra.gmra.mxu2 %vm219_vm1, %v2560_v6  ;;  %v2565_v9 = vld [vmem:[%s3128_s4 + $0x79] sm:$0xff]  ;;  %v2556_v10 = vld [vmem:[%s3128_s4 + $0x31] sm:$0xff]  ;;  %v2551_v12 = vld [vmem:[%s3128_s4 + $0x9] sm:$0xff]  ;;  %s2435_s24 = sshll.u32 %s3057_s23, 4  ;;  %s3058_s29 = smov [#allocation4]   ;;  %s2436_s24 = int_to_ptr.vmem [resolvable:$true] %s2435_s24 }
  0x1c   : > { %2570 = vmatmul.msk.f32.vlgmr.msra.gmra.mxu0 %vm219_vm1, %v2550_v8  ;;  %2666 = vmatpush.msk.msrb.mxu3 %vm274_vm0, %v2665_v4  ;;  %v2561_v11 = vld [vmem:[%s3128_s4 + $0x59] sm:$0xff]  ;;  %v2566_v13 = vld [vmem:[%s3128_s4 + $0x81] sm:$0xff]  ;;  %v2745_v16 = vld [vmem:[%s4204_s1 + $0x14] sm:$0xf]  ;;  %s2447_s30 = sshll.u32 %s3058_s29, 4  ;;  %s2449_s6 = sshll.u32 %s4206_s3, 4  ;;  %s2448_s30 = int_to_ptr.vmem [resolvable:$true] %s2447_s30  ;;  %s2450_s6 = int_to_ptr.hbm [resolvable:$true] %s2449_s6 }
  0x1d   : > { %2706 = vmatpush.msk.msrb.mxu0 %vm274_vm0, %v2705_v7  ;;  %2585 = vmatmul.msk.f32.vlgmr.msra.gmra.mxu3 %vm219_vm1, %v2565_v9  ;;  %v2557_v17 = vld [vmem:[%s3128_s4 + $0x39] sm:$0xff]  ;;  %v2562_v18 = vld [vmem:[%s3128_s4 + $0x61] sm:$0xff]  ;;  %v2552_v19 = vld [vmem:[%s3128_s4 + $0x11] sm:$0xff] }
  0x1e   : > { %2786 = vmatpush.msk.msra.mxu2 %vm274_vm0, %v2785_v14  ;;  %2746 = vmatpush.msk.msra.mxu1 %vm274_vm0, %v2745_v16  ;;  %v2567_v20 = vld [vmem:[%s3128_s4 + $0x89] sm:$0xff]  ;;  %v2865_v21 = vld [vmem:[%s4204_s1 + $0x20] sm:$0xf]  ;;  %v2647_v25 = vld [vmem:[%s3128_s4 + $0x12] sm:$0xff] }
  0x1f   : > { %2826 = vmatpush.msk.msra.mxu3 %vm274_vm0, %v2825_v15  ;;  %2866 = vmatpush.msk.msra.mxu0 %vm274_vm0, %v2865_v21  ;;  %v2558_v22 = vld [vmem:[%s3128_s4 + $0x41] sm:$0xff]  ;;  %v2563_v23 = vld [vmem:[%s3128_s4 + $0x69] sm:$0xff]  ;;  %v2553_v24 = vld [vmem:[%s3128_s4 + $0x19] sm:$0xff] }
  0x20   : > { %v2559_v26 = vld [vmem:[%s3128_s4 + $0x49] sm:$0xff]  ;;  %v2564_v27 = vld [vmem:[%s3128_s4 + $0x71] sm:$0xff]  ;;  %v2554_v28 = vld [vmem:[%s3128_s4 + $0x21] sm:$0xff] }
  0x21   : > { %v2648_v29 = vld [vmem:[%s3128_s4 + $0x1a] sm:$0xff]  ;;  %v2607_v31 = vld [vmem:[%s3128_s4 + $0x2] sm:$0xff]  ;;  %v2608_v35 = vld [vmem:[%s3128_s4 + $0xa] sm:$0xff] }
  0x22   : > { %v178_v30 = vld [vmem:[%s3128_s4] sm:$0xff]  ;;  %v2687_v32 = vld [vmem:[%s3128_s4 + $0x13] sm:$0xff]  ;;  %v179_v34 = vld [vmem:[%s3128_s4 + $0x8] sm:$0xff] }
  0x23   : > { %2576 = vmatmul.msk.f32.gmra.mxu1 %vm219_vm1, %v2556_v10  ;;  %2581 = vmatmul.msk.f32.gmra.mxu2 %vm219_vm1, %v2561_v11  ;;  %v2649_v33 = vld [vmem:[%s3128_s4 + $0x22] sm:$0xff]  ;;  %v2650_v37 = vld [vmem:[%s3128_s4 + $0x2a] sm:$0xff]  ;;  %v2651_v40 = vld [vmem:[%s3128_s4 + $0x32] sm:$0xff] }
  0x24   : > { %2571 = vmatmul.msk.f32.gmra.mxu0 %vm219_vm1, %v2551_v12  ;;  %v2688_v36 = vld [vmem:[%s3128_s4 + $0x1b] sm:$0xff]  ;;  %v180_v38 = vld [vmem:[%s3128_s4 + $0x10] sm:$0xff]  ;;  %v2689_v39 = vld [vmem:[%s3128_s4 + $0x23] sm:$0xff] }
  0x25   : > { %2586 = vmatmul.msk.f32.gmra.mxu3 %vm219_vm1, %v2566_v13  ;;  %v181_v41 = vld [vmem:[%s3128_s4 + $0x18] sm:$0xff]  ;;  %v2690_v42 = vld [vmem:[%s3128_s4 + $0x2b] sm:$0xff]  ;;  %v182_v44 = vld [vmem:[%s3128_s4 + $0x20] sm:$0xff] }
  0x26   : > { %v2652_v43 = vld [vmem:[%s3128_s4 + $0x3a] sm:$0xff]  ;;  %v2653_v46 = vld [vmem:[%s3128_s4 + $0x42] sm:$0xff]  ;;  %v2654_v49 = vld [vmem:[%s3128_s4 + $0x4a] sm:$0xff] }
  0x27   : > { %v2691_v45 = vld [vmem:[%s3128_s4 + $0x33] sm:$0xff]  ;;  %v183_v47 = vld [vmem:[%s3128_s4 + $0x28] sm:$0xff]  ;;  %v2692_v48 = vld [vmem:[%s3128_s4 + $0x3b] sm:$0xff] }
  0x28   : > { %v184_v50 = vld [vmem:[%s3128_s4 + $0x30] sm:$0xff]  ;;  %v2693_v51 = vld [vmem:[%s3128_s4 + $0x43] sm:$0xff]  ;;  %v185_v53 = vld [vmem:[%s3128_s4 + $0x38] sm:$0xff] }
  0x29   : > { %v2655_v52 = vld [vmem:[%s3128_s4 + $0x52] sm:$0xff]  ;;  %v2656_v55 = vld [vmem:[%s3128_s4 + $0x5a] sm:$0xff]  ;;  %v2657_v58 = vld [vmem:[%s3128_s4 + $0x62] sm:$0xff] }
  0x2a   : > { %v2694_v54 = vld [vmem:[%s3128_s4 + $0x4b] sm:$0xff]  ;;  %v186_v56 = vld [vmem:[%s3128_s4 + $0x40] sm:$0xff]  ;;  %v2695_v57 = vld [vmem:[%s3128_s4 + $0x53] sm:$0xff] }
  0x2b   : > { %2577 = vmatmul.msk.f32.gmra.mxu1 %vm219_vm1, %v2557_v17  ;;  %2582 = vmatmul.msk.f32.gmra.mxu2 %vm219_vm1, %v2562_v18  ;;  %v187_v59 = vld [vmem:[%s3128_s4 + $0x48] sm:$0xff]  ;;  %v2696_v60 = vld [vmem:[%s3128_s4 + $0x5b] sm:$0xff]  ;;  %v188_v62 = vld [vmem:[%s3128_s4 + $0x50] sm:$0xff] }
  0x2c   : > { %2572 = vmatmul.msk.f32.gmra.mxu0 %vm219_vm1, %v2552_v19  ;;  %v2658_v61 = vld [vmem:[%s3128_s4 + $0x6a] sm:$0xff]  ;;  %v2659_v0 = vld [vmem:[%s3128_s4 + $0x72] sm:$0xff]  ;;  %v2660_v5 = vld [vmem:[%s3128_s4 + $0x7a] sm:$0xff] }
  0x2d   : > { %2587 = vmatmul.msk.f32.gmra.mxu3 %vm219_vm1, %v2567_v20  ;;  %v2697_v63 = vld [vmem:[%s3128_s4 + $0x63] sm:$0xff]  ;;  %v189_v2 = vld [vmem:[%s3128_s4 + $0x58] sm:$0xff]  ;;  %v2698_v4 = vld [vmem:[%s3128_s4 + $0x6b] sm:$0xff] }
  0x2e   : > { %v190_v8 = vld [vmem:[%s3128_s4 + $0x60] sm:$0xff]  ;;  %v2699_v11 = vld [vmem:[%s3128_s4 + $0x73] sm:$0xff]  ;;  %v191_v15 = vld [vmem:[%s3128_s4 + $0x68] sm:$0xff] }
  0x2f   : > { %v2661_v12 = vld [vmem:[%s3128_s4 + $0x82] sm:$0xff]  ;;  %v2662_v19 = vld [vmem:[%s3128_s4 + $0x8a] sm:$0xff] }
  0x30   : > { %v2700_v18 = vld [vmem:[%s3128_s4 + $0x7b] sm:$0xff] }
  0x33   : > { %2578 = vmatmul.msk.f32.gmra.mxu1 %vm219_vm1, %v2558_v22  ;;  %2583 = vmatmul.msk.f32.gmra.mxu2 %vm219_vm1, %v2563_v23  ;;  %v192_v22 = vld [vmem:[%s3128_s4 + $0x70] sm:$0xff] }
  0x34   : > { %2573 = vmatmul.msk.f32.gmra.mxu0 %vm219_vm1, %v2553_v24 }
  0x35   : > { %2667 = vmatmul.msk.f32.vlgmr.msrb.gmra.mxu3 %vm219_vm1, %v2647_v25 }
  0x3b   : > { %2579 = vmatmul.msk.f32.gmra.mxu1 %vm219_vm1, %v2559_v26  ;;  %2584 = vmatmul.msk.f32.gmra.mxu2 %vm219_vm1, %v2564_v27  ;;  %v2663_v26 = vld [vmem:[%s3128_s4 + $0x92] sm:$0xff] }
  0x3c   : > { %2574 = vmatmul.msk.f32.gmra.mxu0 %vm219_vm1, %v2554_v28 }
  0x3d   : > { %2668 = vmatmul.msk.f32.gmra.mxu3 %vm219_vm1, %v2648_v29 }
  0x43   : > { %2589 = vmatmul.msk.f32.vlgmr.msrb.gmra.mxu1 %vm219_vm1, %v178_v30  ;;  %2627 = vmatmul.msk.f32.vlgmr.msrb.gmra.mxu2 %vm219_vm1, %v2607_v31 }
  0x44   : > { %2707 = vmatmul.msk.f32.vlgmr.msrb.gmra.mxu0 %vm219_vm1, %v2687_v32  ;;  %v2702_v32 = vld [vmem:[%s3128_s4 + $0x8b] sm:$0xff] }
  0x45   : > { %2669 = vmatmul.msk.f32.gmra.mxu3 %vm219_vm1, %v2649_v33 }
  0x4b   : > { %2590 = vmatmul.msk.f32.gmra.mxu1 %vm219_vm1, %v179_v34  ;;  %2628 = vmatmul.msk.f32.gmra.mxu2 %vm219_vm1, %v2608_v35 }
  0x4c   : > { %2708 = vmatmul.msk.f32.gmra.mxu0 %vm219_vm1, %v2688_v36  ;;  %v194_v36 = vld [vmem:[%s3128_s4 + $0x80] sm:$0xff] }
  0x4d   : > { %2670 = vmatmul.msk.f32.gmra.mxu3 %vm219_vm1, %v2650_v37 }
  0x53   : > { %2591 = vmatmul.msk.f32.gmra.mxu1 %vm219_vm1, %v180_v38  ;;  %2629 = vmatmul.msk.f32.gmra.mxu2 %vm219_vm1, %v2647_v25  ;;  %v2701_v25 = vld [vmem:[%s3128_s4 + $0x83] sm:$0xff] }
  0x54   : > { %2709 = vmatmul.msk.f32.gmra.mxu0 %vm219_vm1, %v2689_v39  ;;  %v2703_v39 = vld [vmem:[%s3128_s4 + $0x93] sm:$0xff] }
  0x55   : > { %2671 = vmatmul.msk.f32.gmra.mxu3 %vm219_vm1, %v2651_v40 }
  0x5b   : > { %2592 = vmatmul.msk.f32.gmra.mxu1 %vm219_vm1, %v181_v41  ;;  %2630 = vmatmul.msk.f32.gmra.mxu2 %vm219_vm1, %v2648_v29  ;;  %v193_v29 = vld [vmem:[%s3128_s4 + $0x78] sm:$0xff] }
  0x5c   : > { %2710 = vmatmul.msk.f32.gmra.mxu0 %vm219_vm1, %v2690_v42 }
  0x5d   : > { %2672 = vmatmul.msk.f32.gmra.mxu3 %vm219_vm1, %v2652_v43 }
  0x63   : > { %2593 = vmatmul.msk.f32.gmra.mxu1 %vm219_vm1, %v182_v44  ;;  %2631 = vmatmul.msk.f32.gmra.mxu2 %vm219_vm1, %v2649_v33  ;;  %v2664_v33 = vld [vmem:[%s3128_s4 + $0x9a] sm:$0xff] }
  0x64   : > { %2711 = vmatmul.msk.f32.gmra.mxu0 %vm219_vm1, %v2691_v45  ;;  %v195_v45 = vld [vmem:[%s3128_s4 + $0x88] sm:$0xff] }
  0x65   : > { %2673 = vmatmul.msk.f32.gmra.mxu3 %vm219_vm1, %v2653_v46 }
  0x6b   : > { %2594 = vmatmul.msk.f32.gmra.mxu1 %vm219_vm1, %v183_v47  ;;  %2632 = vmatmul.msk.f32.gmra.mxu2 %vm219_vm1, %v2650_v37 }
  0x6c   : > { %2712 = vmatmul.msk.f32.gmra.mxu0 %vm219_vm1, %v2692_v48 }
  0x6d   : > { %2674 = vmatmul.msk.f32.gmra.mxu3 %vm219_vm1, %v2654_v49 }
  0x73   : > { %2595 = vmatmul.msk.f32.gmra.mxu1 %vm219_vm1, %v184_v50  ;;  %2633 = vmatmul.msk.f32.gmra.mxu2 %vm219_vm1, %v2651_v40  ;;  %v2807_v40 = vld [vmem:[%s3128_s4 + $0x25] sm:$0xff]  ;;  %v2808_v50 = vld [vmem:[%s3128_s4 + $0x2d] sm:$0xff] }
  0x74   : > { %2713 = vmatmul.msk.f32.gmra.mxu0 %vm219_vm1, %v2693_v51 }
  0x75   : > { %2675 = vmatmul.msk.f32.gmra.mxu3 %vm219_vm1, %v2655_v52 }
  0x7b   : > { %2596 = vmatmul.msk.f32.gmra.mxu1 %vm219_vm1, %v185_v53  ;;  %2634 = vmatmul.msk.f32.gmra.mxu2 %vm219_vm1, %v2652_v43 }
  0x7c   : > { %2714 = vmatmul.msk.f32.gmra.mxu0 %vm219_vm1, %v2694_v54 }
  0x7d   : > { %2676 = vmatmul.msk.f32.gmra.mxu3 %vm219_vm1, %v2656_v55 }
  0x83   : > { %2597 = vmatmul.msk.f32.gmra.mxu1 %vm219_vm1, %v186_v56  ;;  %2635 = vmatmul.msk.f32.gmra.mxu2 %vm219_vm1, %v2653_v46  ;;  %v2727_v56 = vld [vmem:[%s3128_s4 + $0x14] sm:$0xff] }
  0x84   : > { %2715 = vmatmul.msk.f32.gmra.mxu0 %vm219_vm1, %v2695_v57  ;;  %v2767_v57 = vld [vmem:[%s3128_s4 + $0x24] sm:$0xff] }
  0x85   : > { %2677 = vmatmul.msk.f32.gmra.mxu3 %vm219_vm1, %v2657_v58 }
  0x8b   : > { %2598 = vmatmul.msk.f32.gmra.mxu1 %vm219_vm1, %v187_v59  ;;  %2636 = vmatmul.msk.f32.gmra.mxu2 %vm219_vm1, %v2654_v49  ;;  %v2704_v49 = vld [vmem:[%s3128_s4 + $0x9b] sm:$0xff] }
  0x8c   : > { %2716 = vmatmul.msk.f32.gmra.mxu0 %vm219_vm1, %v2696_v60 }
  0x8d   : > { %2678 = vmatmul.msk.f32.gmra.mxu3 %vm219_vm1, %v2658_v61 }
  0x93   : > { %2599 = vmatmul.msk.f32.gmra.mxu1 %vm219_vm1, %v188_v62  ;;  %2637 = vmatmul.msk.f32.gmra.mxu2 %vm219_vm1, %v2655_v52  ;;  %v2809_v62 = vld [vmem:[%s3128_s4 + $0x35] sm:$0xff] }
  0x94   : > { %2717 = vmatmul.msk.f32.gmra.mxu0 %vm219_vm1, %v2697_v63 }
  0x95   : > { %2679 = vmatmul.msk.f32.gmra.mxu3 %vm219_vm1, %v2659_v0 }
  0x98   : > { %v3277_v1 = vpop.f32.mrf.mxu1 }
  0x99   : > { %v295_v3 = vpop.f32.mrf.mxu0 }
  0x9b   : > { %2600 = vmatmul.msk.f32.gmra.mxu1 %vm219_vm1, %v189_v2  ;;  %2638 = vmatmul.msk.f32.gmra.mxu2 %vm219_vm1, %v2656_v55 }
  0x9c   : > { %2718 = vmatmul.msk.f32.gmra.mxu0 %vm219_vm1, %v2698_v4 }
  0x9d   : > { %2680 = vmatmul.msk.f32.gmra.mxu3 %vm219_vm1, %v2660_v5 }
  0x9e   : > { %v3286_v6 = vpop.f32.mrf.mxu2 }
  0xa0   : > { %v3288_v7 = vpop.f32.mrf.mxu1  ;;  %v3291_v9 = vpop.f32.mrf.mxu3 }
  0xa1   : > { %v3293_v10 = vpop.f32.mrf.mxu0 }
  0xa3   : > { %2601 = vmatmul.msk.f32.gmra.mxu1 %vm219_vm1, %v190_v8  ;;  %2639 = vmatmul.msk.f32.gmra.mxu2 %vm219_vm1, %v2657_v58  ;;  %v2768_v8 = vld [vmem:[%s3128_s4 + $0x2c] sm:$0xff] }
  0xa4   : > { %2719 = vmatmul.msk.f32.gmra.mxu0 %vm219_vm1, %v2699_v11 }
  0xa5   : > { %2681 = vmatmul.msk.f32.gmra.mxu3 %vm219_vm1, %v2661_v12 }
  0xa6   : > { %v3301_v13 = vpop.f32.mrf.mxu2 }
  0xa8   : > { %v3303_v14 = vpop.f32.mrf.mxu1  ;;  %v3306_v16 = vpop.f32.mrf.mxu3 }
  0xa9   : > { %v3308_v17 = vpop.f32.mrf.mxu0 }
  0xab   : > { %2602 = vmatmul.msk.f32.gmra.mxu1 %vm219_vm1, %v191_v15  ;;  %2640 = vmatmul.msk.f32.gmra.mxu2 %vm219_vm1, %v2658_v61  ;;  %v2847_v61 = vld [vmem:[%s3128_s4 + $0x26] sm:$0xff]  ;;  %v2848_v15 = vld [vmem:[%s3128_s4 + $0x2e] sm:$0xff] }
  0xac   : > { %2720 = vmatmul.msk.f32.gmra.mxu0 %vm219_vm1, %v2700_v18  ;;  %v2810_v18 = vld [vmem:[%s3128_s4 + $0x3d] sm:$0xff] }
  0xad   : > { %2682 = vmatmul.msk.f32.gmra.mxu3 %vm219_vm1, %v2662_v19 }
  0xae   : > { %v3316_v20 = vpop.f32.mrf.mxu2 }
  0xb0   : > { %v3318_v21 = vpop.f32.mrf.mxu1  ;;  %v3321_v23 = vpop.f32.mrf.mxu3 }
  0xb1   : > { %v3323_v24 = vpop.f32.mrf.mxu0 }
  0xb3   : > { %2603 = vmatmul.msk.f32.gmra.mxu1 %vm219_vm1, %v192_v22  ;;  %2641 = vmatmul.msk.f32.gmra.mxu2 %vm219_vm1, %v2659_v0 }
  0xb4   : > { %2721 = vmatmul.msk.f32.gmra.mxu0 %vm219_vm1, %v2701_v25 }
  0xb5   : > { %2683 = vmatmul.msk.f32.gmra.mxu3 %vm219_vm1, %v2663_v26 }
  0xb6   : > { %v3331_v27 = vpop.f32.mrf.mxu2 }
  0xb8   : > { %v3333_v28 = vpop.f32.mrf.mxu1  ;;  %v743_v30 = vpop.f32.mrf.mxu3 }
  0xb9   : > { %v3336_v31 = vpop.f32.mrf.mxu0 }
  0xbb   : > { %2604 = vmatmul.msk.f32.gmra.mxu1 %vm219_vm1, %v193_v29  ;;  %2642 = vmatmul.msk.f32.gmra.mxu2 %vm219_vm1, %v2660_v5  ;;  %v2728_v5 = vld [vmem:[%s3128_s4 + $0x1c] sm:$0xff]  ;;  %v2769_v29 = vld [vmem:[%s3128_s4 + $0x34] sm:$0xff] }
  0xbc   : > { %2722 = vmatmul.msk.f32.gmra.mxu0 %vm219_vm1, %v2702_v32 }
  0xbd   : > { %2684 = vmatmul.msk.f32.gmra.mxu3 %vm219_vm1, %v2664_v33 }
  0xbe   : > { %v3344_v34 = vpop.f32.mrf.mxu2 }
  0xc0   : > { %v423_v35 = vpop.f32.mrf.mxu1  ;;  %v746_v37 = vpop.f32.mrf.mxu3 }
  0xc1   : > { %v911_v38 = vpop.f32.mrf.mxu0  ;;  %v424_v41 = vadd.f32 %v423_v35, %v295_v3  ;;  %v2849_v35 = vld [vmem:[%s3128_s4 + $0x36] sm:$0xff] }
  0xc3   : > { %2605 = vmatmul.msk.f32.gmra.mxu1 %vm219_vm1, %v194_v36  ;;  %2643 = vmatmul.msk.f32.gmra.mxu2 %vm219_vm1, %v2661_v12  ;;  %v2811_v36 = vld [vmem:[%s3128_s4 + $0x45] sm:$0xff] }
  0xc4   : > { %2723 = vmatmul.msk.f32.gmra.mxu0 %vm219_vm1, %v2703_v39 }
  0xc5   : > { %2827 = vmatmul.msk.f32.vlgmr.msra.gmra.mxu3 %vm219_vm1, %v2807_v40 }
  0xc6   : > { %v573_v42 = vpop.f32.mrf.mxu2 }
  0xc7   : > { %v627_v43 = vadd.f32 %v573_v42, %v424_v41  ;;  %v2770_v41 = vld [vmem:[%s3128_s4 + $0x3c] sm:$0xff] }
  0xc8   : > { %v426_v44 = vpop.f32.mrf.mxu1  ;;  %v749_v46 = vpop.f32.mrf.mxu3 }
  0xc9   : > { %v797_v47 = vadd.f32 %v743_v30, %v627_v43  ;;  %v914_v48 = vpop.f32.mrf.mxu0  ;;  %v427_v52 = vadd.f32 %v426_v44, %v3293_v10 }
  0xcb   : > { %v3356_v51 = vadd.f32 %v911_v38, %v797_v47  ;;  %2606 = vmatmul.msk.f32.gmra.mxu1 %vm219_vm1, %v195_v45  ;;  %2644 = vmatmul.msk.f32.gmra.mxu2 %vm219_vm1, %v2662_v19  ;;  %v2850_v45 = vld [vmem:[%s3128_s4 + $0x3e] sm:$0xff] }
  0xcc   : > { %2724 = vmatmul.msk.f32.gmra.mxu0 %vm219_vm1, %v2704_v49 }
  0xcd   : > { %2828 = vmatmul.msk.f32.gmra.mxu3 %vm219_vm1, %v2808_v50 }
  0xce   : > { %v576_v53 = vpop.f32.mrf.mxu2 }
  0xcf   : > { %v628_v54 = vadd.f32 %v576_v53, %v427_v52  ;;  %v2771_v52 = vld [vmem:[%s3128_s4 + $0x44] sm:$0xff] }
  0xd0   : > { %v429_v55 = vpop.f32.mrf.mxu1  ;;  %v752_v58 = vpop.f32.mrf.mxu3 }
  0xd1   : > { %v798_v59 = vadd.f32 %v746_v37, %v628_v54  ;;  %v917_v60 = vpop.f32.mrf.mxu0  ;;  %v430_v0 = vadd.f32 %v429_v55, %v3308_v17 }
  0xd3   : > { %v3367_v63 = vadd.f32 %v914_v48, %v798_v59  ;;  %2747 = vmatmul.msk.f32.vlgmr.msra.gmra.mxu1 %vm219_vm1, %v2727_v56  ;;  %2787 = vmatmul.msk.f32.vlgmr.msra.gmra.mxu2 %vm219_vm1, %v2767_v57  ;;  %v2851_v56 = vld [vmem:[%s3128_s4 + $0x46] sm:$0xff] }
  0xd4   : > { %2867 = vmatmul.msk.f32.vlgmr.msra.gmra.mxu0 %vm219_vm1, %v2847_v61 }
  0xd5   : > { %2829 = vmatmul.msk.f32.gmra.mxu3 %vm219_vm1, %v2809_v62  ;;  %v2772_v62 = vld [vmem:[%s3128_s4 + $0x4c] sm:$0xff] }
  0xd6   : > { %v579_v2 = vpop.f32.mrf.mxu2 }
  0xd7   : > { %v629_v3 = vadd.f32 %v579_v2, %v430_v0 }
  0xd8   : > { %v432_v4 = vpop.f32.mrf.mxu1  ;;  %v755_v10 = vpop.f32.mrf.mxu3 }
  0xd9   : > { %v799_v11 = vadd.f32 %v749_v46, %v629_v3  ;;  %v920_v12 = vpop.f32.mrf.mxu0  ;;  %v433_v17 = vadd.f32 %v432_v4, %v3323_v24  ;;  %v2812_v46 = vld [vmem:[%s3128_s4 + $0x4d] sm:$0xff] }
  0xda   : > { %v2852_v4 = vld [vmem:[%s3128_s4 + $0x4e] sm:$0xff] }
  0xdb   : > { %v3378_v19 = vadd.f32 %v917_v60, %v799_v11  ;;  %2748 = vmatmul.msk.f32.gmra.mxu1 %vm219_vm1, %v2728_v5  ;;  %2788 = vmatmul.msk.f32.gmra.mxu2 %vm219_vm1, %v2768_v8  ;;  %v2814_v5 = vld [vmem:[%s3128_s4 + $0x5d] sm:$0xff] }
  0xdc   : > { %2868 = vmatmul.msk.f32.gmra.mxu0 %vm219_vm1, %v2848_v15  ;;  %v2773_v15 = vld [vmem:[%s3128_s4 + $0x54] sm:$0xff] }
  0xdd   : > { %2830 = vmatmul.msk.f32.gmra.mxu3 %vm219_vm1, %v2810_v18 }
  0xde   : > { %v582_v22 = vpop.f32.mrf.mxu2 }
  0xdf   : > { %v630_v25 = vadd.f32 %v582_v22, %v433_v17 }
  0xe0   : > { %v435_v26 = vpop.f32.mrf.mxu1  ;;  %v758_v30 = vpop.f32.mrf.mxu3 }
  0xe1   : > { %v800_v32 = vadd.f32 %v752_v58, %v630_v25  ;;  %v923_v33 = vpop.f32.mrf.mxu0  ;;  %v436_v24 = vadd.f32 %v435_v26, %v3336_v31  ;;  %v2853_v25 = vld [vmem:[%s3128_s4 + $0x56] sm:$0xff]  ;;  %v2815_v26 = vld [vmem:[%s3128_s4 + $0x65] sm:$0xff] }
  0xe3   : > { %v3388_v37 = vadd.f32 %v920_v12, %v800_v32  ;;  %2749 = vmatmul.msk.f32.gmra.mxu1 %vm219_vm1, %v2767_v57  ;;  %2789 = vmatmul.msk.f32.gmra.mxu2 %vm219_vm1, %v2769_v29  ;;  %v2813_v57 = vld [vmem:[%s3128_s4 + $0x55] sm:$0xff] }
  0xe4   : > { %2869 = vmatmul.msk.f32.gmra.mxu0 %vm219_vm1, %v2849_v35  ;;  %v2774_v35 = vld [vmem:[%s3128_s4 + $0x5c] sm:$0xff] }
  0xe5   : > { %2831 = vmatmul.msk.f32.gmra.mxu3 %vm219_vm1, %v2811_v36 }
  0xe6   : > { %v585_v38 = vpop.f32.mrf.mxu2 }
  0xe7   : > { %v631_v39 = vadd.f32 %v585_v38, %v436_v24 }
  0xe8   : > { %v438_v40 = vpop.f32.mrf.mxu1  ;;  %v761_v42 = vpop.f32.mrf.mxu3 }
  0xe9   : > { %v801_v43 = vadd.f32 %v755_v10, %v631_v39  ;;  %v926_v44 = vpop.f32.mrf.mxu0  ;;  %v439_v31 = vadd.f32 %v438_v40, %v3277_v1  ;;  %v2854_v39 = vld [vmem:[%s3128_s4 + $0x5e] sm:$0xff]  ;;  %v2816_v40 = vld [vmem:[%s3128_s4 + $0x6d] sm:$0xff] }
  0xeb   : > { %v3398_v47 = vadd.f32 %v923_v33, %v801_v43  ;;  %2750 = vmatmul.msk.f32.gmra.mxu1 %vm219_vm1, %v2768_v8  ;;  %2790 = vmatmul.msk.f32.gmra.mxu2 %vm219_vm1, %v2770_v41 }
  0xec   : > { %2870 = vmatmul.msk.f32.gmra.mxu0 %vm219_vm1, %v2850_v45  ;;  %v2775_v45 = vld [vmem:[%s3128_s4 + $0x64] sm:$0xff] }
  0xed   : > { %2832 = vmatmul.msk.f32.gmra.mxu3 %vm219_vm1, %v2812_v46 }
  0xee   : > { %v588_v48 = vpop.f32.mrf.mxu2 }
  0xef   : > { %v632_v49 = vadd.f32 %v588_v48, %v439_v31 }
  0xf0   : > { %v441_v50 = vpop.f32.mrf.mxu1  ;;  %v764_v53 = vpop.f32.mrf.mxu3 }
  0xf1   : > { %v802_v54 = vadd.f32 %v758_v30, %v632_v49  ;;  %v929_v55 = vpop.f32.mrf.mxu0  ;;  %v442_v1 = vadd.f32 %v441_v50, %v3288_v7  ;;  %v2855_v49 = vld [vmem:[%s3128_s4 + $0x66] sm:$0xff]  ;;  %v2817_v50 = vld [vmem:[%s3128_s4 + $0x75] sm:$0xff] }
  0xf3   : > { %v3408_v58 = vadd.f32 %v926_v44, %v802_v54  ;;  %2751 = vmatmul.msk.f32.gmra.mxu1 %vm219_vm1, %v2769_v29  ;;  %2791 = vmatmul.msk.f32.gmra.mxu2 %vm219_vm1, %v2771_v52 }
  0xf4   : > { %2871 = vmatmul.msk.f32.gmra.mxu0 %vm219_vm1, %v2851_v56  ;;  %v2776_v56 = vld [vmem:[%s3128_s4 + $0x6c] sm:$0xff] }
  0xf5   : > { %2833 = vmatmul.msk.f32.gmra.mxu3 %vm219_vm1, %v2813_v57 }
  0xf6   : > { %v591_v59 = vpop.f32.mrf.mxu2 }
  0xf7   : > { %v633_v60 = vadd.f32 %v591_v59, %v442_v1 }
  0xf8   : > { %v444_v61 = vpop.f32.mrf.mxu1  ;;  %v767_v0 = vpop.f32.mrf.mxu3 }
  0xf9   : > { %v803_v2 = vadd.f32 %v761_v42, %v633_v60  ;;  %v932_v3 = vpop.f32.mrf.mxu0  ;;  %v445_v7 = vadd.f32 %v444_v61, %v3303_v14  ;;  %v2856_v60 = vld [vmem:[%s3128_s4 + $0x6e] sm:$0xff]  ;;  %v2818_v61 = vld [vmem:[%s3128_s4 + $0x7d] sm:$0xff] }
  0xfb   : > { %v3418_v8 = vadd.f32 %v929_v55, %v803_v2  ;;  %2752 = vmatmul.msk.f32.gmra.mxu1 %vm219_vm1, %v2770_v41  ;;  %2792 = vmatmul.msk.f32.gmra.mxu2 %vm219_vm1, %v2772_v62 }
  0xfc   : > { %2872 = vmatmul.msk.f32.gmra.mxu0 %vm219_vm1, %v2852_v4 }
  0xfd   : > { %2834 = vmatmul.msk.f32.gmra.mxu3 %vm219_vm1, %v2814_v5  ;;  %v3466_v5 = vld [vmem:[%s3128_s4 + $0x74] sm:$0xff] }
  0xfe   : > { %v594_v10 = vpop.f32.mrf.mxu2 }
  0xff   : > { %v634_v11 = vadd.f32 %v594_v10, %v445_v7 }
 0x100   : > { %v447_v12 = vpop.f32.mrf.mxu1  ;;  %v770_v18 = vpop.f32.mrf.mxu3 }
 0x101   : > { %v804_v17 = vadd.f32 %v764_v53, %v634_v11  ;;  %v935_v22 = vpop.f32.mrf.mxu0  ;;  %v448_v14 = vadd.f32 %v447_v12, %v3318_v21  ;;  %v2857_v12 = vld [vmem:[%s3128_s4 + $0x76] sm:$0xff] }
 0x103   : > { %v3428_v29 = vadd.f32 %v932_v3, %v804_v17  ;;  %2753 = vmatmul.msk.f32.gmra.mxu1 %vm219_vm1, %v2771_v52  ;;  %2793 = vmatmul.msk.f32.gmra.mxu2 %vm219_vm1, %v2773_v15  ;;  %v1656_v3 = vlaneseq }
 0x104   : > { %2873 = vmatmul.msk.f32.gmra.mxu0 %vm219_vm1, %v2853_v25 }
 0x105   : > { %2835 = vmatmul.msk.f32.gmra.mxu3 %vm219_vm1, %v2815_v26 }
 0x106   : > { %v597_v30 = vpop.f32.mrf.mxu2 }
 0x107   : > { %v635_v32 = vadd.f32 %v597_v30, %v448_v14 }
 0x108   : > { %v450_v33 = vpop.f32.mrf.mxu1  ;;  %v773_v36 = vpop.f32.mrf.mxu3 }
 0x109   : > { %v805_v24 = vadd.f32 %v767_v0, %v635_v32  ;;  %v938_v38 = vpop.f32.mrf.mxu0  ;;  %v451_v21 = vadd.f32 %v450_v33, %v3333_v28 }
 0x10b   : > { %v3438_v41 = vadd.f32 %v935_v22, %v805_v24  ;;  %2754 = vmatmul.msk.f32.gmra.mxu1 %vm219_vm1, %v2772_v62  ;;  %2794 = vmatmul.msk.f32.gmra.mxu2 %vm219_vm1, %v2774_v35  ;;  %v3485_v24 = vld [vmem:[%s3128_s4 + $0x7c] sm:$0xff] }
 0x10c   : > { %2874 = vmatmul.msk.f32.gmra.mxu0 %vm219_vm1, %v2854_v39 }
 0x10d   : > { %2836 = vmatmul.msk.f32.gmra.mxu3 %vm219_vm1, %v2816_v40 }
 0x10e   : > { %v600_v42 = vpop.f32.mrf.mxu2 }
 0x10f   : > { %v636_v43 = vadd.f32 %v600_v42, %v451_v21 }
 0x110   : > { %v453_v44 = vpop.f32.mrf.mxu1  ;;  %v776_v46 = vpop.f32.mrf.mxu3 }
 0x111   : > { %v806_v31 = vadd.f32 %v770_v18, %v636_v43  ;;  %v941_v48 = vpop.f32.mrf.mxu0  ;;  %v454_v28 = vadd.f32 %v453_v44, %v3286_v6  ;;  %v2819_v18 = vld [vmem:[%s3128_s4 + $0x85] sm:$0xff]  ;;  %v2820_v43 = vld [vmem:[%s3128_s4 + $0x8d] sm:$0xff] }
 0x113   : > { %v3448_v52 = vadd.f32 %v938_v38, %v806_v31  ;;  %2755 = vmatmul.msk.f32.gmra.mxu1 %vm219_vm1, %v2773_v15  ;;  %2795 = vmatmul.msk.f32.gmra.mxu2 %vm219_vm1, %v2775_v45  ;;  %v3469_v15 = vshrl.u32 %v1656_v3, 7  ;;  %v3056_v31 = vmov 0  }
 0x114   : > { %2875 = vmatmul.msk.f32.gmra.mxu0 %vm219_vm1, %v2855_v49 }
 0x115   : > { %2837 = vmatmul.msk.f32.gmra.mxu3 %vm219_vm1, %v2817_v50  ;;  %v1679_v25 = vshrl.u32 %v3469_v15, 16 }
 0x116   : > { %v603_v53 = vpop.f32.mrf.mxu2 }
 0x117   : > { %v637_v54 = vadd.f32 %v603_v53, %v454_v28  ;;  %v3482_v33 = vmul.u32 14564, %v1679_v25  ;;  %v1684_v21 = vmul.u32 58254, %v1679_v25 }
 0x118   : > { %v456_v55 = vpop.f32.mrf.mxu1  ;;  %v779_v57 = vpop.f32.mrf.mxu3 }
 0x119   : > { %v807_v1 = vadd.f32 %v773_v36, %v637_v54  ;;  %v944_v59 = vpop.f32.mrf.mxu0  ;;  %v457_v6 = vadd.f32 %v456_v55, %v3301_v13  ;;  %v1678_v13 = vand.u32 65535, %v3469_v15  ;;  %v1687_v42 = vshll.u32 %v3482_v33, 16 }
 0x11b   : > { %v3458_v62 = vadd.f32 %v941_v48, %v807_v1  ;;  %2756 = vmatmul.msk.f32.gmra.mxu1 %vm219_vm1, %v2774_v35  ;;  %2796 = vmatmul.msk.f32.gmra.mxu2 %vm219_vm1, %v2776_v56  ;;  %v1682_v26 = vmul.u32 58254, %v1678_v13  ;;  %v1681_v32 = vmul.u32 14564, %v1678_v13 }
 0x11c   : > { %2876 = vmatmul.msk.f32.gmra.mxu0 %vm219_vm1, %v2856_v60 }
 0x11d   : > { %2838 = vmatmul.msk.f32.gmra.mxu3 %vm219_vm1, %v2818_v61  ;;  %v1685_v35 = vshll.u32 %v1682_v26, 16  ;;  %v3510_v61 = vld [vmem:[%s3128_s4 + $0x84] sm:$0xff] }
 0x11e   : > { %v606_v0 = vpop.f32.mrf.mxu2 }
 0x11f   : > { %v638_v2 = vadd.f32 %v606_v0, %v457_v6  ;;  %vm1689_vm2 = vc.u32 %v1681_v32, %v1685_v35  ;;  %v1691_v44 = vadd.s32 %v1685_v35, %v1681_v32 }
 0x120   : > { %v459_v4 = vpop.f32.mrf.mxu1  ;;  %v782_v7 = vpop.f32.mrf.mxu3  ;;  %v1690_v48 = vsel %vm1689_vm2, 1, %v3056_v31 }
 0x121   : > { %v808_v10 = vadd.f32 %v776_v46, %v638_v2  ;;  %v947_v11 = vpop.f32.mrf.mxu0  ;;  %v460_v22 = vadd.f32 %v459_v4, %v3316_v20  ;;  %v2858_v20 = vld [vmem:[%s3128_s4 + $0x7e] sm:$0xff]  ;;  %v1692_v49 = vadd.s32 %v1690_v48, %v1684_v21  ;;  %vm1693_vm3 = vc.u32 %v1691_v44, %v1687_v42 }
 0x122   : > { %v1694_v53 = vsel %vm1693_vm3, 1, %v3056_v31 }
 0x123   : > { %v3472_v17 = vadd.f32 %v944_v59, %v808_v10  ;;  %2757 = vmatmul.msk.f32.gmra.mxu1 %vm219_vm1, %v2775_v45  ;;  %2797 = vmatmul.msk.f32.gmra.mxu2 %vm219_vm1, %v3466_v5  ;;  %v3493_v45 = vadd.s32 8, %v3469_v15  ;;  %v1696_v0 = vadd.s32 %v1694_v53, %v1692_v49  ;;  %v2859_v10 = vld [vmem:[%s3128_s4 + $0x86] sm:$0xff] }
 0x124   : > { %2877 = vmatmul.msk.f32.gmra.mxu0 %vm219_vm1, %v2857_v12 }
 0x125   : > { %2839 = vmatmul.msk.f32.gmra.mxu3 %vm219_vm1, %v2819_v18  ;;  %v1707_v50 = vand.u32 65535, %v3493_v45  ;;  %v1708_v54 = vshrl.u32 %v3493_v45, 16  ;;  %v2821_v18 = vld [vmem:[%s3128_s4 + $0x95] sm:$0xff] }
 0x126   : > { %v609_v14 = vpop.f32.mrf.mxu2 }
 0x127   : > { %v639_v30 = vadd.f32 %v609_v14, %v460_v22  ;;  %v1710_v1 = vmul.u32 14564, %v1707_v50  ;;  %v3507_v59 = vmul.u32 14564, %v1708_v54  ;;  %v3518_v22 = vadd.s32 16, %v3469_v15 }
 0x128   : > { %v462_v36 = vpop.f32.mrf.mxu1  ;;  %v3487_v38 = vpop.f32.mrf.mxu3 }
 0x129   : > { %v809_v39 = vadd.f32 %v779_v57, %v639_v30  ;;  %v950_v40 = vpop.f32.mrf.mxu0  ;;  %v463_v28 = vadd.f32 %v462_v36, %v3331_v27  ;;  %v1686_v27 = vshrl.u32 %v1682_v26, 16  ;;  %v1716_v12 = vshll.u32 %v3507_v59, 16 }
 0x12a   : > { %v1736_v32 = vand.u32 65535, %v3518_v22  ;;  %v1737_v36 = vshrl.u32 %v3518_v22, 16 }
 0x12b   : > { %v3495_v46 = vadd.f32 %v947_v11, %v809_v39  ;;  %2758 = vmatmul.msk.f32.gmra.mxu1 %vm219_vm1, %v2776_v56  ;;  %2798 = vmatmul.msk.f32.gmra.mxu2 %vm219_vm1, %v3485_v24  ;;  %v1711_v56 = vmul.u32 58254, %v1707_v50  ;;  %v1713_v11 = vmul.u32 58254, %v1708_v54  ;;  %v1697_v14 = vadd.s32 %v1696_v0, %v1686_v27  ;;  %v2860_v54 = vld [vmem:[%s3128_s4 + $0x8e] sm:$0xff] }
 0x12c   : > { %2878 = vmatmul.msk.f32.gmra.mxu0 %vm219_vm1, %v2858_v20  ;;  %v1740_v39 = vmul.u32 58254, %v1736_v32  ;;  %v1739_v20 = vmul.u32 14564, %v1736_v32  ;;  %v1741_v21 = vmul.u32 14564, %v1737_v36  ;;  %v1717_v0 = vshrl.u32 %v3507_v59, 16 }
 0x12d   : > { %2840 = vmatmul.msk.f32.gmra.mxu3 %vm219_vm1, %v2820_v43  ;;  %v1714_v2 = vshll.u32 %v1711_v56, 16  ;;  %v3535_v43 = vld [vmem:[%s3128_s4 + $0x8c] sm:$0xff] }
 0x12e   : > { %v612_v55 = vpop.f32.mrf.mxu2  ;;  %v1743_v50 = vshll.u32 %v1740_v39, 16 }
 0x12f   : > { %v640_v57 = vadd.f32 %v612_v55, %v463_v28  ;;  %vm1718_vm4 = vc.u32 %v1710_v1, %v1714_v2  ;;  %v1720_v13 = vadd.s32 %v1714_v2, %v1710_v1  ;;  %v1742_v55 = vmul.u32 58254, %v1737_v36  ;;  %v2822_v1 = vld [vmem:[%s3128_s4 + $0x9d] sm:$0xff] }
 0x130   : > { %v465_v60 = vpop.f32.mrf.mxu1  ;;  %v3512_v6 = vpop.f32.mrf.mxu3  ;;  %v1719_v26 = vsel %vm1718_vm4, 1, %v3056_v31  ;;  %vm1747_vm6 = vc.u32 %v1739_v20, %v1743_v50  ;;  %v1749_v27 = vadd.s32 %v1743_v50, %v1739_v20 }
 0x131   : > { %v810_v3 = vadd.f32 %v782_v7, %v640_v57  ;;  %v953_v4 = vpop.f32.mrf.mxu0  ;;  %v1688_v7 = vshrl.u32 %v3482_v33, 16  ;;  %v1721_v30 = vadd.s32 %v1719_v26, %v1713_v11  ;;  %vm1722_vm5 = vc.u32 %v1720_v13, %v1716_v12 }
 0x132   : > { %v466_v35 = vadd.f32 %v465_v60, %v3344_v34  ;;  %v1715_v34 = vshrl.u32 %v1711_v56, 16  ;;  %v1745_v57 = vshll.u32 %v1741_v21, 16  ;;  %v3549_v56 = vadd.s32 24, %v3469_v15 }
 0x133   : > { %v3520_v25 = vadd.f32 %v950_v40, %v810_v3  ;;  %2759 = vmatmul.msk.f32.gmra.mxu1 %vm219_vm1, %v3466_v5  ;;  %2799 = vmatmul.msk.f32.gmra.mxu2 %vm219_vm1, %v3510_v61  ;;  %v1723_v5 = vsel %vm1722_vm5, 1, %v3056_v31  ;;  %v1698_v48 = vadd.s32 %v1697_v14, %v1688_v7  ;;  %v1748_v3 = vsel %vm1747_vm6, 1, %v3056_v31 }
 0x134   : > { %2879 = vmatmul.msk.f32.gmra.mxu0 %vm219_vm1, %v2859_v10  ;;  %v1725_v49 = vadd.s32 %v1723_v5, %v1721_v30  ;;  %v1750_v10 = vadd.s32 %v1748_v3, %v1742_v55  ;;  %vm1751_vm7 = vc.u32 %v1749_v27, %v1745_v57  ;;  %v1766_v13 = vshrl.u32 %v3549_v56, 16  ;;  %v3560_v30 = vld [vmem:[%s3128_s4 + $0x94] sm:$0xff] }
 0x135   : > { %2841 = vmatmul.msk.f32.gmra.mxu3 %vm219_vm1, %v2821_v18  ;;  %v1752_v12 = vsel %vm1751_vm7, 1, %v3056_v31  ;;  %v1765_v18 = vand.u32 65535, %v3549_v56  ;;  %v1746_v7 = vshrl.u32 %v1741_v21, 16 }
 0x136   : > { %v615_v33 = vpop.f32.mrf.mxu2  ;;  %v1726_v2 = vadd.s32 %v1725_v49, %v1715_v34  ;;  %v1754_v26 = vadd.s32 %v1752_v12, %v1750_v10  ;;  %v1770_v36 = vmul.u32 14564, %v1766_v13  ;;  %v1771_v34 = vmul.u32 58254, %v1766_v13 }
 0x137   : > { %v641_v40 = vadd.f32 %v615_v33, %v466_v35  ;;  %v1768_v35 = vmul.u32 14564, %v1765_v18  ;;  %v1769_v5 = vmul.u32 58254, %v1765_v18 }
 0x138   : > { %v468_v42 = vpop.f32.mrf.mxu1  ;;  %v3537_v44 = vpop.f32.mrf.mxu3  ;;  %v1727_v20 = vadd.s32 %v1726_v2, %v1717_v0 }
 0x139   : > { %v811_v28 = vadd.f32 %v3487_v38, %v641_v40  ;;  %v956_v53 = vpop.f32.mrf.mxu0  ;;  %v1699_v38 = vshrl.u32 %v1698_v48, 4  ;;  %v2861_v40 = vld [vmem:[%s3128_s4 + $0x96] sm:$0xff]  ;;  %v2823_v48 = vld [vmem:[%s3128_s4 + $0xa5] sm:$0xff]  ;;  %v1772_v49 = vshll.u32 %v1769_v5, 16  ;;  %v1773_v57 = vshrl.u32 %v1769_v5, 16 }
 0x13b   : > { %v3542_v60 = vadd.f32 %v953_v4, %v811_v28  ;;  %2760 = vmatmul.msk.f32.gmra.mxu1 %vm219_vm1, %v3485_v24  ;;  %2800 = vmatmul.msk.f32.gmra.mxu2 %vm219_vm1, %v3535_v43  ;;  %v469_v4 = vadd.f32 %v468_v42, %v3291_v9  ;;  %v1744_v24 = vshrl.u32 %v1740_v39, 16  ;;  %v1700_v32 = vmul.u32 18, %v1699_v38 }
 0x13c   : > { %2880 = vmatmul.msk.f32.gmra.mxu0 %vm219_vm1, %v2860_v54  ;;  %v1774_v28 = vshll.u32 %v1770_v36, 16  ;;  %v3574_v54 = vadd.s32 32, %v3469_v15  ;;  %vm1776_vm8 = vc.u32 %v1768_v35, %v1772_v49  ;;  %v1778_v55 = vadd.s32 %v1772_v49, %v1768_v35 }
 0x13d   : > { %2842 = vmatmul.msk.f32.gmra.mxu3 %vm219_vm1, %v2822_v1  ;;  %v1755_v42 = vadd.s32 %v1754_v26, %v1744_v24  ;;  %v1777_v1 = vsel %vm1776_vm8, 1, %v3056_v31  ;;  %v1775_v24 = vshrl.u32 %v1770_v36, 16  ;;  %v2824_v36 = vld [vmem:[%s3128_s4 + $0xad] sm:$0xff] }
 0x13e   : > { %v618_v11 = vpop.f32.mrf.mxu2  ;;  %v1779_v38 = vadd.s32 %v1777_v1, %v1771_v34  ;;  %vm1780_vm9 = vc.u32 %v1778_v55, %v1774_v28  ;;  %v1794_v0 = vand.u32 65535, %v3574_v54  ;;  %v1795_v2 = vshrl.u32 %v3574_v54, 16 }
 0x13f   : > { %v642_v59 = vadd.f32 %v618_v11, %v469_v4  ;;  %v1756_v50 = vadd.s32 %v1755_v42, %v1746_v7  ;;  %v3587_v11 = vld [vmem:[%s3128_s4 + $0x9c] sm:$0xff]  ;;  %v3599_v42 = vadd.s32 40, %v3469_v15 }
 0x140   : > { %v471_v14 = vpop.f32.mrf.mxu1  ;;  %v3562_v9 = vpop.f32.mrf.mxu3  ;;  %v1797_v13 = vmul.u32 14564, %v1794_v0  ;;  %v3591_v7 = vmul.u32 14564, %v1795_v2  ;;  %v1800_v5 = vmul.u32 58254, %v1795_v2 }
 0x141   : > { %v812_v33 = vadd.f32 %v3512_v6, %v642_v59  ;;  %v959_v39 = vpop.f32.mrf.mxu0  ;;  %v3578_v6 = vsub.s32 %v3469_v15, %v1700_v32  ;;  %v1757_v4 = vshrl.u32 %v1756_v50, 4  ;;  %v1798_v59 = vmul.u32 58254, %v1794_v0  ;;  %v2862_v32 = vld [vmem:[%s3128_s4 + $0x9e] sm:$0xff] }
 0x142   : > { %v1804_v0 = vshrl.u32 %v3591_v7, 16 }
 0x143   : > { %v3567_v21 = vadd.f32 %v956_v53, %v812_v33  ;;  %2761 = vmatmul.msk.f32.gmra.mxu1 %vm219_vm1, %v3510_v61  ;;  %2801 = vmatmul.msk.f32.gmra.mxu2 %vm219_vm1, %v3560_v30  ;;  %v472_v53 = vadd.f32 %v471_v14, %v3306_v16  ;;  %v1728_v61 = vshrl.u32 %v1727_v20, 4  ;;  %v1781_v16 = vsel %vm1780_vm9, 1, %v3056_v31 }
 0x144   : > { %2881 = vmatmul.msk.f32.gmra.mxu0 %vm219_vm1, %v2861_v40  ;;  %v1783_v18 = vadd.s32 %v1781_v16, %v1779_v38  ;;  %vm2197_vm10 = vcmp.ne.s32.totalorder %v3578_v6, 0  ;;  %v1801_v40 = vshll.u32 %v1798_v59, 16  ;;  %v1803_v20 = vshll.u32 %v3591_v7, 16 }
 0x145   : > { %2843 = vmatmul.msk.f32.gmra.mxu3 %vm219_vm1, %v2823_v48  ;;  %v1729_v35 = vmul.u32 18, %v1728_v61  ;;  %vm2215_vm11 = vcmp.lt.s32.totalorder %v3578_v6, 0  ;;  %v1758_v34 = vmul.u32 18, %v1757_v4  ;;  %v1802_v1 = vshrl.u32 %v1798_v59, 16  ;;  %v2783_v4 = vld [vmem:[%s3128_s4 + $0xa4] sm:$0xff] }
 0x146   : > { %v621_v27 = vpop.f32.mrf.mxu2  ;;  %v1784_v33 = vadd.s32 %v1783_v18, %v1773_v57  ;;  %vm1805_vm12 = vc.u32 %v1797_v13, %v1801_v40  ;;  %v1807_v50 = vadd.s32 %v1801_v40, %v1797_v13  ;;  %vm3624_vm14 = vmand %vm2215_vm11, %vm2197_vm10  ;;  %v3644_v7 = vadd.s32 48, %v3469_v15 }
 0x147   : > { %v643_v3 = vadd.f32 %v621_v27, %v472_v53  ;;  %v1806_v55 = vsel %vm1805_vm12, 1, %v3056_v31  ;;  %v1824_v53 = vshrl.u32 %v3599_v42, 16 }
 0x148   : > { %v474_v10 = vpop.f32.mrf.mxu1  ;;  %v3589_v12 = vpop.f32.mrf.mxu3  ;;  %v1785_v49 = vadd.s32 %v1784_v33, %v1775_v24  ;;  %v1808_v27 = vadd.s32 %v1806_v55, %v1800_v5  ;;  %vm1809_vm13 = vc.u32 %v1807_v50, %v1803_v20  ;;  %v1852_v20 = vand.u32 65535, %v3644_v7 }
 0x149   : > { %v813_v26 = vadd.f32 %v3537_v44, %v643_v3  ;;  %v962_v14 = vpop.f32.mrf.mxu0  ;;  %v3609_v44 = vadd.s32 18, %v3578_v6  ;;  %v475_v28 = vadd.f32 %v474_v10, %v3321_v23  ;;  %v1810_v2 = vsel %vm1809_vm13, 1, %v3056_v31 }
 0x14a   : > { %v1786_v57 = vshrl.u32 %v1785_v49, 4  ;;  %v1812_v10 = vadd.s32 %v1810_v2, %v1808_v27  ;;  %v3638_v13 = vmul.u32 14564, %v1824_v53 }
 0x14b   : > { %v3601_v48 = vadd.f32 %v959_v39, %v813_v26  ;;  %2762 = vmatmul.msk.f32.gmra.mxu1 %vm219_vm1, %v3535_v43  ;;  %2802 = vmatmul.msk.f32.gmra.mxu2 %vm219_vm1, %v3587_v11  ;;  %v1823_v39 = vand.u32 65535, %v3599_v42  ;;  %v3616_v43 = vsub.s32 %v3493_v45, %v1729_v35  ;;  %v3629_v45 = vsub.s32 %v3518_v22, %v1758_v34 }
 0x14c   : > { %2882 = vmatmul.msk.f32.gmra.mxu0 %vm219_vm1, %v2862_v32  ;;  %v1787_v16 = vmul.u32 18, %v1786_v57  ;;  %v2863_v32 = vld [vmem:[%s3128_s4 + $0xa6] sm:$0xff]  ;;  %v2269_v5 = vsel %vm3624_vm14, %v3609_v44, %v3578_v6 }
 0x14d   : > { %2844 = vmatmul.msk.f32.gmra.mxu3 %vm219_vm1, %v2824_v36  ;;  %v3636_v18 = vmul.u32 58254, %v1823_v39  ;;  %v1826_v35 = vmul.u32 14564, %v1823_v39  ;;  %vm2198_vm15 = vcmp.ne.s32.totalorder %v3616_v43, 0  ;;  %v1813_v36 = vadd.s32 %v1812_v10, %v1802_v1 }
 0x14e   : > { %v624_v61 = vpop.f32.mrf.mxu2  ;;  %vm2216_vm0 = vcmp.lt.s32.totalorder %v3616_v43, 0  ;;  %v2252_v6 = vadd.s32 18, %v3616_v43  ;;  %vm2199_vm2 = vcmp.ne.s32.totalorder %v3629_v45, 0  ;;  %vm2217_vm4 = vcmp.lt.s32.totalorder %v3629_v45, 0 }
 0x14f   : > { %v644_v38 = vadd.f32 %v624_v61, %v475_v28  ;;  %v1830_v33 = vshll.u32 %v3636_v18, 16  ;;  %v1814_v44 = vadd.s32 %v1813_v36, %v1804_v0  ;;  %v3669_v39 = vmul.u32 58254, %v1852_v20  ;;  %v2784_v61 = vld [vmem:[%s3128_s4 + $0xac] sm:$0xff]  ;;  %vm3678_vm7 = vmand %vm2216_vm0, %vm2198_vm15 }
 0x150   : > { %v1079_v3 = vpop.f32.mrf.mxu1  ;;  %v3634_v24 = vpop.f32.mrf.mxu3  ;;  %v1855_v10 = vmul.u32 14564, %v1852_v20  ;;  %vm3704_vm9 = vmand %vm2217_vm4, %vm2199_vm2  ;;  %vm3727_vm11 = vcmp.lt.s32.totalorder %v2269_v5, 16 }
 0x151   : > { %v814_v59 = vadd.f32 %v3562_v9, %v644_v38  ;;  %v1133_v26 = vadd.f32 %v1079_v3, %v3356_v51  ;;  %v1584_v22 = vpop.f32.mrf.mxu0  ;;  %v3658_v51 = vsub.s32 %v3549_v56, %v1787_v16  ;;  %v1829_v9 = vmul.u32 58254, %v1824_v53 }
 0x152   : > { %vm1834_vm3 = vc.u32 %v1826_v35, %v1830_v33  ;;  %v1853_v56 = vshrl.u32 %v3644_v7, 16  ;;  %v1815_v49 = vshrl.u32 %v1814_v44, 4  ;;  %v1831_v38 = vshrl.u32 %v3636_v18, 16 }
 0x153   : > { %v3652_v40 = vadd.f32 %v962_v14, %v814_v59  ;;  %2763 = vmatmul.msk.f32.gmra.mxu1 %vm219_vm1, %v3560_v30  ;;  %2803 = vmatmul.msk.f32.gmra.mxu2 %vm219_vm1, %v2783_v4  ;;  %v1832_v14 = vshll.u32 %v3638_v13, 16  ;;  %v1836_v30 = vadd.s32 %v1830_v33, %v1826_v35  ;;  %v1835_v50 = vsel %vm1834_vm3, 1, %v3056_v31  ;;  %v2864_v4 = vld [vmem:[%s3128_s4 + $0xae] sm:$0xff] }
 0x154   : > { %2883 = vmatmul.msk.f32.gmra.mxu0 %vm219_vm1, %v2863_v32  ;;  %vm2200_vm5 = vcmp.ne.s32.totalorder %v3658_v51, 0  ;;  %vm2218_vm6 = vcmp.lt.s32.totalorder %v3658_v51, 0  ;;  %v1837_v55 = vadd.s32 %v1835_v50, %v1829_v9  ;;  %v1816_v27 = vmul.u32 18, %v1815_v49 }
 0x155   : > { %vm1838_vm8 = vc.u32 %v1836_v30, %v1832_v14  ;;  %v3685_v23 = vmul.u32 14564, %v1853_v56  ;;  %v2253_v59 = vadd.s32 18, %v3629_v45  ;;  %v1859_v35 = vshll.u32 %v3669_v39, 16  ;;  %vm3716_vm10 = vmand %vm2218_vm6, %vm2200_vm5 }
 0x156   : > { %v1248_v34 = vpop.f32.mrf.mxu2  ;;  %v1839_v16 = vsel %vm1838_vm8, 1, %v3056_v31  ;;  %v3725_v9 = vadd.s32 56, %v3469_v15  ;;  %v1860_v49 = vshrl.u32 %v3669_v39, 16 }
 0x157   : > { %v1302_v28 = vadd.f32 %v1248_v34, %v1133_v26  ;;  %v1833_v26 = vshrl.u32 %v3638_v13, 16  ;;  %v1841_v32 = vadd.s32 %v1839_v16, %v1837_v55  ;;  %v3709_v13 = vadd.s32 18, %v3658_v51 }
 0x158   : > { %v1082_v53 = vpop.f32.mrf.mxu1  ;;  %v3682_v1 = vpop.f32.mrf.mxu3  ;;  %v1861_v33 = vshll.u32 %v3685_v23, 16 }
 0x159   : > { %v1134_v0 = vadd.f32 %v1082_v53, %v3367_v63  ;;  %v1470_v2 = vadd.f32 %v3589_v12, %v1302_v28  ;;  %v1587_v3 = vpop.f32.mrf.mxu0  ;;  %v2270_v63 = vsel %vm3678_vm7, %v2252_v6, %v3616_v43  ;;  %v3721_v43 = vsub.s32 %v3574_v54, %v1816_v27 }
 0x15a   : > { %v1842_v36 = vadd.s32 %v1841_v32, %v1831_v38  ;;  %v1865_v6 = vadd.s32 %v1859_v35, %v1855_v10  ;;  %vm3731_vm12 = vcmp.lt.s32.totalorder %v2270_v63, 16  ;;  %v2271_v54 = vsel %vm3704_vm9, %v2253_v59, %v3629_v45 }
 0x15b   : > { %v1638_v18 = vadd.f32 %v1584_v22, %v1470_v2  ;;  %2764 = vmatmul.msk.f32.gmra.mxu1 %vm219_vm1, %v3587_v11  ;;  %2804 = vmatmul.msk.f32.gmra.mxu2 %vm219_vm1, %v2784_v61  ;;  %v1858_v22 = vmul.u32 58254, %v1853_v56  ;;  %v2272_v5 = vsel %vm3716_vm10, %v3709_v13, %v3658_v51  ;;  %vm2201_vm13 = vcmp.ne.s32.totalorder %v3721_v43, 0 }
 0x15c   : > { %2884 = vmatmul.msk.f32.gmra.mxu0 %vm219_vm1, %v2864_v4  ;;  %vm1863_vm1 = vc.u32 %v1855_v10, %v1859_v35  ;;  %v1843_v30 = vadd.s32 %v1842_v36, %v1833_v26  ;;  %vm1867_vm14 = vc.u32 %v1865_v6, %v1861_v33  ;;  %v1881_v45 = vand.u32 65535, %v3725_v9 }
 0x15d   : > { %v1864_v56 = vsel %vm1863_vm1, 1, %v3056_v31  ;;  %v1882_v61 = vshrl.u32 %v3725_v9, 16  ;;  %v2341_v57 = vsel %vm3727_vm11, %v1638_v18, 0.0  ;;  %v1868_v38 = vsel %vm1867_vm14, 1, %v3056_v31 }
 0x15e   : > { %v1251_v44 = vpop.f32.mrf.mxu2  ;;  %v1866_v50 = vadd.s32 %v1864_v56, %v1858_v22  ;;  %v1844_v53 = vshrl.u32 %v1843_v30, 4  ;;  %vm3754_vm15 = vcmp.lt.s32.totalorder %v2271_v54, 16  ;;  %v3758_v16 = vmul.u32 58254, %v1881_v45 }
 0x15f   : > { %v1303_v34 = vadd.f32 %v1251_v44, %v1134_v0  ;;  %v3761_v10 = vadd.s32 64, %v3469_v15  ;;  %vm2219_vm0 = vcmp.lt.s32.totalorder %v3721_v43, 0  ;;  %v1884_v35 = vmul.u32 14564, %v1881_v45 }
 0x160   : > { %v1085_v28 = vpop.f32.mrf.mxu1  ;;  %v3744_v55 = vpop.f32.mrf.mxu3  ;;  %v1845_v2 = vmul.u32 18, %v1844_v53  ;;  %v1870_v4 = vadd.s32 %v1868_v38, %v1866_v50  ;;  %v1888_v18 = vshll.u32 %v3758_v16, 16  ;;  %v2386_v63 = vmul.f32 %v2341_v57, %v2341_v57  ;;  %vm3795_vm7 = vmand %vm2219_vm0, %vm2201_vm13 }
 0x161   : > { %v1135_v27 = vadd.f32 %v1085_v28, %v3378_v19  ;;  %v1471_v51 = vadd.f32 %v3634_v24, %v1303_v34  ;;  %v1590_v39 = vpop.f32.mrf.mxu0  ;;  %v1862_v19 = vshrl.u32 %v3685_v23, 16  ;;  %v3765_v24 = vmul.u32 14564, %v1882_v61 }
 0x162   : > { %v3768_v26 = vsub.s32 %v3599_v42, %v1845_v2  ;;  %v1871_v32 = vadd.s32 %v1870_v4, %v1860_v49  ;;  %v2255_v13 = vadd.s32 18, %v3721_v43  ;;  %v1910_v33 = vand.u32 65535, %v3761_v10 }
 0x163   : > { %v1639_v59 = vadd.f32 %v1587_v3, %v1471_v51  ;;  %v1887_v3 = vmul.u32 58254, %v1882_v61  ;;  %v1890_v23 = vshll.u32 %v3765_v24, 16  ;;  %v1911_v6 = vshrl.u32 %v3761_v10, 16 }
 0x164   : > { %vm2202_vm2 = vcmp.ne.s32.totalorder %v3768_v26, 0  ;;  %v1872_v20 = vadd.s32 %v1871_v32, %v1862_v19  ;;  %vm2220_vm3 = vcmp.lt.s32.totalorder %v3768_v26, 0  ;;  %vm1892_vm4 = vc.u32 %v1884_v35, %v1888_v18 }
 0x165   : > { %v2342_v12 = vsel %vm3731_vm12, %v1639_v59, 0.0  ;;  %v1894_v30 = vadd.s32 %v1888_v18, %v1884_v35  ;;  %v3784_v50 = vadd.s32 18, %v3768_v26  ;;  %vm3786_vm5 = vcmp.lt.s32.totalorder %v2272_v5, 16  ;;  %vm3804_vm8 = vmand %vm2220_vm3, %vm2202_vm2 }
 0x166   : > { %v2360_v22 = vadd.f32 %v2342_v12, %v2341_v57  ;;  %v2387_v11 = vmul.f32 %v2342_v12, %v2342_v12  ;;  %v1254_v36 = vpop.f32.mrf.mxu2  ;;  %v1873_v28 = vshrl.u32 %v1872_v20, 4  ;;  %v1893_v45 = vsel %vm1892_vm4, 1, %v3056_v31 }
 0x167   : > { %v1304_v42 = vadd.f32 %v1254_v36, %v1135_v27  ;;  %vm1896_vm6 = vc.u32 %v1894_v30, %v1890_v23  ;;  %v1913_v61 = vmul.u32 14564, %v1910_v33  ;;  %v1914_v57 = vmul.u32 58254, %v1910_v33 }
 0x168   : > { %v2404_v44 = vadd.f32 %v2387_v11, %v2386_v63  ;;  %v1088_v54 = vpop.f32.mrf.mxu1  ;;  %v3778_v14 = vpop.f32.mrf.mxu3  ;;  %v1895_v51 = vadd.s32 %v1893_v45, %v1887_v3  ;;  %v1897_v5 = vsel %vm1896_vm6, 1, %v3056_v31  ;;  %v1891_v2 = vshrl.u32 %v3765_v24, 16 }
 0x169   : > { %v1136_v56 = vadd.f32 %v1088_v54, %v3388_v37  ;;  %v1472_v34 = vadd.f32 %v3682_v1, %v1304_v42  ;;  %v1593_v49 = vpop.f32.mrf.mxu0  ;;  %v1874_v1 = vmul.u32 18, %v1873_v28  ;;  %v3810_v4 = vmul.u32 14564, %v1911_v6 }
 0x16a   : > { %v1917_v59 = vshll.u32 %v1914_v57, 16  ;;  %v1899_v35 = vadd.s32 %v1897_v5, %v1895_v51  ;;  %v1916_v18 = vmul.u32 58254, %v1911_v6  ;;  %v3818_v11 = vadd.s32 72, %v3469_v15 }
 0x16b   : > { %v1640_v27 = vadd.f32 %v1590_v39, %v1472_v34  ;;  %v1889_v39 = vshrl.u32 %v3758_v16, 16  ;;  %v3815_v32 = vsub.s32 %v3644_v7, %v1874_v1  ;;  %v2273_v24 = vsel %vm3795_vm7, %v2255_v13, %v3721_v43 }
 0x16c   : > { %vm1921_vm9 = vc.u32 %v1913_v61, %v1917_v59  ;;  %v2274_v7 = vsel %vm3804_vm8, %v3784_v50, %v3768_v26  ;;  %v1919_v0 = vshll.u32 %v3810_v4, 16  ;;  %v1918_v42 = vshrl.u32 %v1914_v57, 16 }
 0x16d   : > { %v2343_v19 = vsel %vm3754_vm15, %v1640_v27, 0.0  ;;  %v1900_v33 = vadd.s32 %v1899_v35, %v1889_v39  ;;  %v1922_v20 = vsel %vm1921_vm9, 1, %v3056_v31  ;;  %vm2203_vm10 = vcmp.ne.s32.totalorder %v3815_v32, 0 }
 0x16e   : > { %v2361_v63 = vadd.f32 %v2360_v22, %v2343_v19  ;;  %v2388_v12 = vmul.f32 %v2343_v19, %v2343_v19  ;;  %v1257_v3 = vpop.f32.mrf.mxu2  ;;  %v1923_v13 = vadd.s32 %v1917_v59, %v1913_v61  ;;  %vm3834_vm11 = vcmp.lt.s32.totalorder %v2273_v24, 16 }
 0x16f   : > { %v1305_v16 = vadd.f32 %v1257_v3, %v1136_v56  ;;  %vm2221_vm1 = vcmp.lt.s32.totalorder %v3815_v32, 0  ;;  %v1924_v56 = vadd.s32 %v1922_v20, %v1916_v18  ;;  %v1939_v34 = vand.u32 65535, %v3818_v11 }
 0x170   : > { %v2405_v36 = vadd.f32 %v2404_v44, %v2388_v12  ;;  %v1091_v22 = vpop.f32.mrf.mxu1  ;;  %v3828_v23 = vpop.f32.mrf.mxu3  ;;  %v1901_v44 = vadd.s32 %v1900_v33, %v1891_v2  ;;  %v3841_v45 = vadd.s32 18, %v3815_v32  ;;  %vm1925_vm12 = vc.u32 %v1923_v13, %v1919_v0  ;;  %vm3852_vm13 = vmand %vm2221_vm1, %vm2203_vm10 }
 0x171   : > { %v1137_v6 = vadd.f32 %v1091_v22, %v3398_v47  ;;  %v1473_v54 = vadd.f32 %v3744_v55, %v1305_v16  ;;  %v1596_v43 = vpop.f32.mrf.mxu0  ;;  %v1940_v47 = vshrl.u32 %v3818_v11, 16  ;;  %v1926_v61 = vsel %vm1925_vm12, 1, %v3056_v31 }
 0x172   : > { %v1902_v55 = vshrl.u32 %v1901_v44, 4  ;;  %v1942_v57 = vmul.u32 14564, %v1939_v34  ;;  %v1943_v27 = vmul.u32 58254, %v1939_v34  ;;  %v1920_v1 = vshrl.u32 %v3810_v4, 16 }
 0x173   : > { %v1641_v28 = vadd.f32 %v1593_v49, %v1473_v54  ;;  %v1928_v51 = vadd.s32 %v1926_v61, %v1924_v56  ;;  %v1944_v5 = vmul.u32 14564, %v1940_v47  ;;  %v1945_v12 = vmul.u32 58254, %v1940_v47 }
 0x174   : > { %v1903_v59 = vmul.u32 18, %v1902_v55  ;;  %v1946_v19 = vshll.u32 %v1943_v27, 16  ;;  %v3857_v4 = vadd.s32 80, %v3469_v15  ;;  %v3890_v30 = vadd.s32 88, %v3469_v15 }
 0x175   : > { %v2344_v37 = vsel %vm3786_vm5, %v1641_v28, 0.0  ;;  %v1929_v53 = vadd.s32 %v1928_v51, %v1918_v42  ;;  %v1948_v0 = vshll.u32 %v1944_v5, 16  ;;  %v1949_v56 = vshrl.u32 %v1944_v5, 16 }
 0x176   : > { %v2362_v39 = vadd.f32 %v2361_v63, %v2344_v37  ;;  %v2389_v49 = vmul.f32 %v2344_v37, %v2344_v37  ;;  %v1260_v2 = vpop.f32.mrf.mxu2  ;;  %v3862_v24 = vsub.s32 %v3725_v9, %v1903_v59  ;;  %vm1950_vm14 = vc.u32 %v1942_v57, %v1946_v19 }
 0x177   : > { %v1306_v35 = vadd.f32 %v1260_v2, %v1137_v6  ;;  %v1930_v6 = vadd.s32 %v1929_v53, %v1920_v1  ;;  %v1951_v42 = vsel %vm1950_vm14, 1, %v3056_v31  ;;  %v1952_v9 = vadd.s32 %v1946_v19, %v1942_v57 }
 0x178   : > { %v2406_v3 = vadd.f32 %v2405_v36, %v2389_v49  ;;  %v1094_v63 = vpop.f32.mrf.mxu1  ;;  %v3859_v16 = vpop.f32.mrf.mxu3  ;;  %v2275_v36 = vsel %vm3852_vm13, %v3841_v45, %v3815_v32  ;;  %vm2204_vm15 = vcmp.ne.s32.totalorder %v3862_v24, 0  ;;  %vm2222_vm0 = vcmp.lt.s32.totalorder %v3862_v24, 0 }
 0x179   : > { %v1138_v22 = vadd.f32 %v1094_v63, %v3408_v58  ;;  %v1474_v33 = vadd.f32 %v3778_v14, %v1306_v35  ;;  %v1599_v20 = vpop.f32.mrf.mxu0  ;;  %v1931_v13 = vshrl.u32 %v1930_v6, 4  ;;  %v1953_v44 = vadd.s32 %v1951_v42, %v1945_v12  ;;  %vm3885_vm3 = vmand %vm2222_vm0, %vm2204_vm15 }
 0x17a   : > { %v1968_v58 = vand.u32 65535, %v3857_v4  ;;  %v1947_v14 = vshrl.u32 %v1943_v27, 16  ;;  %vm1954_vm2 = vc.u32 %v1952_v9, %v1948_v0  ;;  %v1969_v34 = vshrl.u32 %v3857_v4, 16 }
 0x17b   : > { %v1642_v54 = vadd.f32 %v1596_v43, %v1474_v33  ;;  %v3878_v32 = vadd.s32 18, %v3862_v24  ;;  %v1932_v45 = vmul.u32 18, %v1931_v13  ;;  %v1955_v47 = vsel %vm1954_vm2, 1, %v3056_v31 }
 0x17c   : > { %v1957_v27 = vadd.s32 %v1955_v47, %v1953_v44  ;;  %v1972_v51 = vmul.u32 58254, %v1968_v58  ;;  %v3895_v5 = vmul.u32 14564, %v1969_v34  ;;  %v1971_v19 = vmul.u32 14564, %v1968_v58 }
 0x17d   : > { %v2345_v28 = vsel %vm3834_vm11, %v1642_v54, 0.0  ;;  %v3893_v1 = vsub.s32 %v3761_v10, %v1932_v45  ;;  %vm3906_vm4 = vcmp.lt.s32.totalorder %v2274_v7, 16  ;;  %v2276_v12 = vsel %vm3885_vm3, %v3878_v32, %v3862_v24 }
 0x17e   : > { %v2363_v55 = vadd.f32 %v2362_v39, %v2345_v28  ;;  %v2390_v43 = vmul.f32 %v2345_v28, %v2345_v28  ;;  %v1263_v61 = vpop.f32.mrf.mxu2  ;;  %v1958_v59 = vadd.s32 %v1957_v27, %v1947_v14  ;;  %vm3914_vm5 = vcmp.lt.s32.totalorder %v2275_v36, 16 }
 0x17f   : > { %v1307_v37 = vadd.f32 %v1263_v61, %v1138_v22  ;;  %v1975_v38 = vshll.u32 %v1972_v51, 16  ;;  %v1997_v63 = vand.u32 65535, %v3890_v30  ;;  %vm2205_vm6 = vcmp.ne.s32.totalorder %v3893_v1, 0 }
 0x180   : > { %v2407_v39 = vadd.f32 %v2406_v3, %v2390_v43  ;;  %v1097_v49 = vpop.f32.mrf.mxu1  ;;  %v3897_v2 = vpop.f32.mrf.mxu3  ;;  %v1977_v50 = vshll.u32 %v3895_v5, 16  ;;  %v1998_v7 = vshrl.u32 %v3890_v30, 16  ;;  %vm2223_vm7 = vcmp.lt.s32.totalorder %v3893_v1, 0 }
 0x181   : > { %v1139_v35 = vadd.f32 %v1097_v49, %v3418_v8  ;;  %v1475_v18 = vadd.f32 %v3828_v23, %v1307_v37  ;;  %v1602_v53 = vpop.f32.mrf.mxu0  ;;  %v1959_v8 = vadd.s32 %v1958_v59, %v1949_v56  ;;  %v1974_v23 = vmul.u32 58254, %v1969_v34  ;;  %vm3929_vm9 = vmand %vm2223_vm7, %vm2205_vm6 }
 0x182   : > { %vm1979_vm8 = vc.u32 %v1971_v19, %v1975_v38  ;;  %v1981_v22 = vadd.s32 %v1975_v38, %v1971_v19  ;;  %v2259_v6 = vadd.s32 18, %v3893_v1  ;;  %v1976_v42 = vshrl.u32 %v1972_v51, 16 }
 0x183   : > { %v1643_v26 = vadd.f32 %v1599_v20, %v1475_v18  ;;  %v1960_v0 = vshrl.u32 %v1959_v8, 4  ;;  %v1980_v36 = vsel %vm1979_vm8, 1, %v3056_v31  ;;  %v2001_v56 = vmul.u32 58254, %v1997_v63 }
 0x184   : > { %v1982_v44 = vadd.s32 %v1980_v36, %v1974_v23  ;;  %vm1983_vm10 = vc.u32 %v1981_v22, %v1977_v50  ;;  %v2002_v34 = vmul.u32 14564, %v1998_v7  ;;  %v2000_v61 = vmul.u32 14564, %v1997_v63 }
 0x185   : > { %v2346_v33 = vsel %vm3906_vm4, %v1643_v26, 0.0  ;;  %v1961_v13 = vmul.u32 18, %v1960_v0  ;;  %v1984_v43 = vsel %vm1983_vm10, 1, %v3056_v31  ;;  %v1978_v51 = vshrl.u32 %v3895_v5, 16 }
 0x186   : > { %v2364_v20 = vadd.f32 %v2363_v55, %v2346_v33  ;;  %v2391_v9 = vmul.f32 %v2346_v33, %v2346_v33  ;;  %v1266_v54 = vpop.f32.mrf.mxu2  ;;  %v1986_v49 = vadd.s32 %v1984_v43, %v1982_v44  ;;  %v2004_v59 = vshll.u32 %v2001_v56, 16 }
 0x187   : > { %v1308_v58 = vadd.f32 %v1266_v54, %v1139_v35  ;;  %v3936_v55 = vsub.s32 %v3818_v11, %v1961_v13  ;;  %v2003_v11 = vmul.u32 58254, %v1998_v7  ;;  %v2006_v10 = vshll.u32 %v2002_v34, 16 }
 0x188   : > { %v2408_v28 = vadd.f32 %v2407_v39, %v2391_v9  ;;  %v1100_v45 = vpop.f32.mrf.mxu1  ;;  %v3933_v47 = vpop.f32.mrf.mxu3  ;;  %v2277_v39 = vsel %vm3929_vm9, %v2259_v6, %v3893_v1  ;;  %v1987_v18 = vadd.s32 %v1986_v49, %v1976_v42  ;;  %vm2008_vm12 = vc.u32 %v2000_v61, %v2004_v59 }
 0x189   : > { %v1476_v27 = vadd.f32 %v3859_v16, %v1308_v58  ;;  %v1605_v37 = vpop.f32.mrf.mxu0  ;;  %v1140_v19 = vadd.f32 %v1100_v45, %v3428_v29  ;;  %vm2206_vm11 = vcmp.ne.s32.totalorder %v3936_v55, 0  ;;  %vm2224_vm1 = vcmp.lt.s32.totalorder %v3936_v55, 0 }
 0x18a   : > { %v3948_v16 = vadd.s32 18, %v3936_v55  ;;  %v2010_v5 = vadd.s32 %v2004_v59, %v2000_v61  ;;  %v3951_v8 = vadd.s32 96, %v3469_v15  ;;  %v1988_v1 = vadd.s32 %v1987_v18, %v1978_v51  ;;  %vm3964_vm14 = vmand %vm2224_vm1, %vm2206_vm11 }
 0x18b   : > { %v1644_v35 = vadd.f32 %v1602_v53, %v1476_v27  ;;  %v2005_v23 = vshrl.u32 %v2001_v56, 16  ;;  %v2009_v38 = vsel %vm2008_vm12, 1, %v3056_v31  ;;  %vm3975_vm15 = vcmp.lt.s32.totalorder %v2276_v12, 16 }
 0x18c   : > { %v2011_v50 = vadd.s32 %v2009_v38, %v2003_v11  ;;  %vm2012_vm13 = vc.u32 %v2010_v5, %v2006_v10  ;;  %v1989_v0 = vshrl.u32 %v1988_v1, 4  ;;  %v2026_v33 = vand.u32 65535, %v3951_v8 }
 0x18d   : > { %v2347_v29 = vsel %vm3914_vm5, %v1644_v35, 0.0  ;;  %v2013_v22 = vsel %vm2012_vm13, 1, %v3056_v31  ;;  %v2027_v54 = vshrl.u32 %v3951_v8, 16  ;;  %v3980_v56 = vadd.s32 104, %v3469_v15 }
 0x18e   : > { %v2365_v53 = vadd.f32 %v2364_v20, %v2347_v29  ;;  %v2392_v63 = vmul.f32 %v2347_v29, %v2347_v29  ;;  %v1269_v26 = vpop.f32.mrf.mxu2  ;;  %v2007_v20 = vshrl.u32 %v2002_v34, 16  ;;  %v2015_v9 = vadd.s32 %v2013_v22, %v2011_v50 }
 0x18f   : > { %v1309_v7 = vadd.f32 %v1269_v26, %v1140_v19  ;;  %v1990_v14 = vmul.u32 18, %v1989_v0  ;;  %vm3982_vm0 = vcmp.lt.s32.totalorder %v2277_v39, 16  ;;  %v2031_v45 = vmul.u32 14564, %v2027_v54 }
 0x190   : > { %v2409_v6 = vadd.f32 %v2408_v28, %v2392_v63  ;;  %v1103_v42 = vpop.f32.mrf.mxu1  ;;  %v3958_v36 = vpop.f32.mrf.mxu3  ;;  %v2016_v28 = vadd.s32 %v2015_v9, %v2005_v23  ;;  %v2278_v24 = vsel %vm3964_vm14, %v3948_v16, %v3936_v55  ;;  %v2029_v12 = vmul.u32 14564, %v2026_v33 }
 0x191   : > { %v1477_v13 = vadd.f32 %v3897_v2, %v1309_v7  ;;  %v1608_v58 = vpop.f32.mrf.mxu0  ;;  %v2030_v2 = vmul.u32 58254, %v2026_v33  ;;  %v3991_v32 = vsub.s32 %v3857_v4, %v1990_v14  ;;  %v1141_v43 = vadd.f32 %v1103_v42, %v3438_v41 }
 0x192   : > { %v2017_v61 = vadd.s32 %v2016_v28, %v2007_v20  ;;  %v2032_v27 = vmul.u32 58254, %v2027_v54  ;;  %v2055_v59 = vand.u32 65535, %v3980_v56  ;;  %v2056_v35 = vshrl.u32 %v3980_v56, 16 }
 0x193   : > { %v1645_v57 = vadd.f32 %v1605_v37, %v1477_v13  ;;  %v2033_v51 = vshll.u32 %v2030_v2, 16  ;;  %vm2207_vm2 = vcmp.ne.s32.totalorder %v3991_v32, 0  ;;  %v2035_v37 = vshll.u32 %v2031_v45, 16 }
 0x194   : > { %vm2225_vm3 = vcmp.lt.s32.totalorder %v3991_v32, 0  ;;  %v2018_v4 = vshrl.u32 %v2017_v61, 4  ;;  %v4003_v5 = vadd.s32 18, %v3991_v32  ;;  %v2034_v63 = vshrl.u32 %v2030_v2, 16 }
 0x195   : > { %v2348_v49 = vsel %vm3975_vm15, %v1645_v57, 0.0  ;;  %vm2037_vm4 = vc.u32 %v2029_v12, %v2033_v51  ;;  %v2039_v41 = vadd.s32 %v2033_v51, %v2029_v12  ;;  %vm4009_vm5 = vmand %vm2225_vm3, %vm2207_vm2  ;;  %v2036_v7 = vshrl.u32 %v2031_v45, 16 }
 0x196   : > { %v2366_v19 = vadd.f32 %v2365_v53, %v2348_v49  ;;  %v2393_v39 = vmul.f32 %v2348_v49, %v2348_v49  ;;  %v1272_v55 = vpop.f32.mrf.mxu2  ;;  %v2019_v29 = vmul.u32 18, %v2018_v4  ;;  %v2038_v1 = vsel %vm2037_vm4, 1, %v3056_v31 }
 0x197   : > { %v1310_v11 = vadd.f32 %v1272_v55, %v1141_v43  ;;  %v2040_v26 = vadd.s32 %v2038_v1, %v2032_v27  ;;  %vm2041_vm6 = vc.u32 %v2039_v41, %v2035_v37  ;;  %v2059_v22 = vmul.u32 58254, %v2055_v59 }
 0x198   : > { %v2410_v18 = vadd.f32 %v2409_v6, %v2393_v39  ;;  %v1106_v10 = vpop.f32.mrf.mxu1  ;;  %v4000_v16 = vpop.f32.mrf.mxu3  ;;  %v4014_v50 = vsub.s32 %v3890_v30, %v2019_v29  ;;  %v2042_v0 = vsel %vm2041_vm6, 1, %v3056_v31  ;;  %v2060_v42 = vmul.u32 14564, %v2056_v35 }
 0x199   : > { %v1478_v23 = vadd.f32 %v3933_v47, %v1310_v11  ;;  %v1611_v38 = vpop.f32.mrf.mxu0  ;;  %v2044_v6 = vadd.s32 %v2042_v0, %v2040_v26  ;;  %v2058_v47 = vmul.u32 14564, %v2055_v59  ;;  %vm4017_vm7 = vcmp.lt.s32.totalorder %v2278_v24, 16 }
 0x19a   : > { %v2279_v20 = vsel %vm4009_vm5, %v4003_v5, %v3991_v32  ;;  %v2062_v9 = vshll.u32 %v2059_v22, 16  ;;  %v1142_v30 = vadd.f32 %v1106_v10, %v3448_v52  ;;  %v2061_v44 = vmul.u32 58254, %v2056_v35 }
 0x19b   : > { %v1646_v33 = vadd.f32 %v1608_v58, %v1478_v23  ;;  %v2045_v13 = vadd.s32 %v2044_v6, %v2034_v63  ;;  %vm2208_vm8 = vcmp.ne.s32.totalorder %v4014_v50, 0  ;;  %v2064_v2 = vshll.u32 %v2060_v42, 16 }
 0x19c   : > { %vm2226_vm9 = vcmp.lt.s32.totalorder %v4014_v50, 0  ;;  %vm2066_vm10 = vc.u32 %v2058_v47, %v2062_v9  ;;  %v2068_v12 = vadd.s32 %v2062_v9, %v2058_v47  ;;  %v4032_v34 = vadd.s32 112, %v3469_v15 }
 0x19d   : > { %v2349_v54 = vsel %vm3982_vm0, %v1646_v33, 0.0  ;;  %v2046_v57 = vadd.s32 %v2045_v13, %v2036_v7  ;;  %v2067_v52 = vsel %vm2066_vm10, 1, %v3056_v31  ;;  %v4036_v27 = vadd.s32 18, %v4014_v50  ;;  %vm4047_vm1 = vmand %vm2226_vm9, %vm2208_vm8 }
 0x19e   : > { %v2367_v58 = vadd.f32 %v2366_v19, %v2349_v54  ;;  %v2394_v14 = vmul.f32 %v2349_v54, %v2349_v54  ;;  %v1275_v28 = vpop.f32.mrf.mxu2  ;;  %v2069_v49 = vadd.s32 %v2067_v52, %v2061_v44  ;;  %v2063_v59 = vshrl.u32 %v2059_v22, 16 }
 0x19f   : > { %v1311_v45 = vadd.f32 %v1275_v28, %v1142_v30  ;;  %v2047_v51 = vshrl.u32 %v2046_v57, 4  ;;  %vm2070_vm11 = vc.u32 %v2068_v12, %v2064_v2  ;;  %v2084_v19 = vand.u32 65535, %v4032_v34 }
 0x1a0   : > { %v2411_v24 = vadd.f32 %v2410_v18, %v2394_v14  ;;  %v1109_v32 = vpop.f32.mrf.mxu1  ;;  %v4038_v37 = vpop.f32.mrf.mxu3  ;;  %v2085_v39 = vshrl.u32 %v4032_v34, 16  ;;  %v2065_v11 = vshrl.u32 %v2060_v42, 16  ;;  %v2071_v41 = vsel %vm2070_vm11, 1, %v3056_v31 }
 0x1a1   : > { %v1479_v43 = vadd.f32 %v3958_v36, %v1311_v45  ;;  %v1614_v61 = vpop.f32.mrf.mxu0  ;;  %v2048_v4 = vmul.u32 18, %v2047_v51  ;;  %v2073_v35 = vadd.s32 %v2071_v41, %v2069_v49  ;;  %v2088_v18 = vmul.u32 58254, %v2084_v19 }
 0x1a2   : > { %v4051_v10 = vmul.u32 14564, %v2085_v39  ;;  %v4054_v5 = vadd.s32 120, %v3469_v15  ;;  %v1143_v29 = vadd.f32 %v1109_v32, %v3458_v62  ;;  %vm4062_vm12 = vcmp.lt.s32.totalorder %v2279_v20, 16 }
 0x1a3   : > { %v1647_v55 = vadd.f32 %v1611_v38, %v1479_v43  ;;  %v4060_v23 = vsub.s32 %v3951_v8, %v2048_v4  ;;  %v2087_v38 = vmul.u32 14564, %v2084_v19  ;;  %v2074_v7 = vadd.s32 %v2073_v35, %v2063_v59 }
 0x1a4   : > { %v2091_v0 = vshll.u32 %v2088_v18, 16  ;;  %v2280_v62 = vsel %vm4047_vm1, %v4036_v27, %v4014_v50  ;;  %v2090_v6 = vmul.u32 58254, %v2085_v39  ;;  %v2093_v3 = vshll.u32 %v4051_v10, 16 }
 0x1a5   : > { %v2350_v1 = vsel %vm4017_vm7, %v1647_v55, 0.0  ;;  %v2075_v42 = vadd.s32 %v2074_v7, %v2065_v11  ;;  %v2113_v9 = vand.u32 65535, %v4054_v5  ;;  %vm2209_vm13 = vcmp.ne.s32.totalorder %v4060_v23, 0 }
 0x1a6   : > { %v2368_v53 = vadd.f32 %v2367_v58, %v2350_v1  ;;  %v2395_v63 = vmul.f32 %v2350_v1, %v2350_v1  ;;  %v1278_v26 = vpop.f32.mrf.mxu2  ;;  %vm2227_vm14 = vcmp.lt.s32.totalorder %v4060_v23, 0  ;;  %v4076_v20 = vadd.s32 128, %v3469_v15 }
 0x1a7   : > { %v1312_v22 = vadd.f32 %v1278_v26, %v1143_v29  ;;  %v4079_v50 = vadd.s32 18, %v4060_v23  ;;  %v2076_v13 = vshrl.u32 %v2075_v42, 4  ;;  %vm2095_vm15 = vc.u32 %v2087_v38, %v2091_v0  ;;  %vm4090_vm2 = vmand %vm2227_vm14, %vm2209_vm13 }
 0x1a8   : > { %v2412_v47 = vadd.f32 %v2411_v24, %v2395_v63  ;;  %v1112_v8 = vpop.f32.mrf.mxu1  ;;  %v2097_v44 = vadd.s32 %v2091_v0, %v2087_v38  ;;  %v2092_v14 = vshrl.u32 %v2088_v18, 16  ;;  %v2096_v28 = vsel %vm2095_vm15, 1, %v3056_v31  ;;  %v1452_v45 = vpop.f32.mrf.mxu3 }
 0x1a9   : > { %v1480_v30 = vadd.f32 %v4000_v16, %v1312_v22  ;;  %v1617_v54 = vpop.f32.mrf.mxu0  ;;  %v2114_v16 = vshrl.u32 %v4054_v5, 16  ;;  %v1144_v2 = vadd.f32 %v1112_v8, %v3472_v17  ;;  %v2098_v57 = vadd.s32 %v2096_v28, %v2090_v6 }
 0x1aa   : > { %vm2099_vm0 = vc.u32 %v2097_v44, %v2093_v3  ;;  %v2117_v24 = vmul.u32 58254, %v2113_v9  ;;  %v2077_v12 = vmul.u32 18, %v2076_v13  ;;  %v2116_v59 = vmul.u32 14564, %v2113_v9 }
 0x1ab   : > { %v1648_v58 = vadd.f32 %v1614_v61, %v1480_v30  ;;  %v2100_v43 = vsel %vm2099_vm0, 1, %v3056_v31  ;;  %v2118_v61 = vmul.u32 14564, %v2114_v16  ;;  %vm4095_vm3 = vcmp.lt.s32.totalorder %v2280_v62, 16 }
 0x1ac   : > { %v2102_v49 = vadd.s32 %v2100_v43, %v2098_v57  ;;  %v2094_v55 = vshrl.u32 %v4051_v10, 16  ;;  %v2120_v4 = vshll.u32 %v2117_v24, 16  ;;  %v2281_v36 = vsel %vm4090_vm2, %v4079_v50, %v4060_v23 }
 0x1ad   : > { %v2351_v32 = vsel %vm4062_vm12, %v1648_v58, 0.0  ;;  %v2119_v35 = vmul.u32 58254, %v2114_v16  ;;  %v2122_v18 = vshll.u32 %v2118_v61, 16  ;;  %v4106_v38 = vsub.s32 %v3980_v56, %v2077_v12 }
 0x1ae   : > { %v2369_v17 = vadd.f32 %v2368_v53, %v2351_v32  ;;  %v2396_v27 = vmul.f32 %v2351_v32, %v2351_v32  ;;  %v1281_v51 = vpop.f32.mrf.mxu2  ;;  %v2103_v53 = vadd.s32 %v2102_v49, %v2092_v14  ;;  %v2121_v63 = vshrl.u32 %v2117_v24, 16 }
 0x1af   : > { %v1313_v19 = vadd.f32 %v1281_v51, %v1144_v2  ;;  %vm2124_vm4 = vc.u32 %v2116_v59, %v2120_v4  ;;  %v2126_v26 = vadd.s32 %v2120_v4, %v2116_v59  ;;  %v2142_v7 = vand.u32 65535, %v4076_v20 }
 0x1b0   : > { %v2413_v11 = vadd.f32 %v2412_v47, %v2396_v27  ;;  %v1115_v41 = vpop.f32.mrf.mxu1  ;;  %v2104_v22 = vadd.s32 %v2103_v53, %v2094_v55  ;;  %v2123_v33 = vshrl.u32 %v2118_v61, 16  ;;  %v2125_v23 = vsel %vm2124_vm4, 1, %v3056_v31  ;;  %v1455_v30 = vpop.f32.mrf.mxu3 }
 0x1b1   : > { %v1481_v29 = vadd.f32 %v4038_v37, %v1313_v19  ;;  %v1620_v1 = vpop.f32.mrf.mxu0  ;;  %v1145_v10 = vadd.f32 %v1115_v41, %v3495_v46  ;;  %v2127_v62 = vadd.s32 %v2125_v23, %v2119_v35  ;;  %vm2128_vm5 = vc.u32 %v2126_v26, %v2122_v18 }
 0x1b2   : > { %v2143_v37 = vshrl.u32 %v4076_v20, 16  ;;  %v2145_v6 = vmul.u32 14564, %v2142_v7  ;;  %v2105_v47 = vshrl.u32 %v2104_v22, 4  ;;  %v2129_v46 = vsel %vm2128_vm5, 1, %v3056_v31 }
 0x1b3   : > { %v1649_v0 = vadd.f32 %v1617_v54, %v1481_v29  ;;  %v2146_v8 = vmul.u32 58254, %v2142_v7  ;;  %v2131_v54 = vadd.s32 %v2129_v46, %v2127_v62  ;;  %vm2210_vm6 = vcmp.ne.s32.totalorder %v4106_v38, 0 }
 0x1b4   : > { %v2147_v50 = vmul.u32 14564, %v2143_v37  ;;  %v2106_v44 = vmul.u32 18, %v2105_v47  ;;  %vm2228_vm7 = vcmp.lt.s32.totalorder %v4106_v38, 0  ;;  %vm4117_vm8 = vcmp.lt.s32.totalorder %v2281_v36, 16 }
 0x1b5   : > { %v2352_v56 = vsel %vm4095_vm3, %v1649_v0, 0.0  ;;  %v2149_v58 = vshll.u32 %v2146_v8, 16  ;;  %v2132_v16 = vadd.s32 %v2131_v54, %v2121_v63  ;;  %v2264_v52 = vadd.s32 18, %v4106_v38  ;;  %vm4127_vm10 = vmand %vm2228_vm7, %vm2210_vm6 }
 0x1b6   : > { %v2370_v42 = vadd.f32 %v2369_v17, %v2352_v56  ;;  %v2397_v3 = vmul.f32 %v2352_v56, %v2352_v56  ;;  %v1284_v9 = vpop.f32.mrf.mxu2  ;;  %v2151_v2 = vshll.u32 %v2147_v50, 16  ;;  %v2148_v12 = vmul.u32 58254, %v2143_v37 }
 0x1b7   : > { %v1314_v13 = vadd.f32 %v1284_v9, %v1145_v10  ;;  %v2133_v43 = vadd.s32 %v2132_v16, %v2123_v33  ;;  %vm2153_vm9 = vc.u32 %v2145_v6, %v2149_v58  ;;  %v2155_v61 = vadd.s32 %v2149_v58, %v2145_v6 }
 0x1b8   : > { %v2414_v14 = vadd.f32 %v2413_v11, %v2397_v3  ;;  %v1118_v28 = vpop.f32.mrf.mxu1  ;;  %v4123_v17 = vadd.s32 136, %v3469_v15  ;;  %v2150_v49 = vshrl.u32 %v2146_v8, 16  ;;  %v2154_v19 = vsel %vm2153_vm9, 1, %v3056_v31  ;;  %v1458_v10 = vpop.f32.mrf.mxu3 }
 0x1b9   : > { %v1482_v57 = vadd.f32 %v1452_v45, %v1314_v13  ;;  %v1623_v32 = vpop.f32.mrf.mxu0  ;;  %v2107_v45 = vsub.s32 %v4032_v34, %v2106_v44  ;;  %v2134_v59 = vshrl.u32 %v2133_v43, 4  ;;  %vm2157_vm11 = vc.u32 %v2155_v61, %v2151_v2 }
 0x1ba   : > { %v2171_v39 = vand.u32 65535, %v4123_v17  ;;  %v1146_v55 = vadd.f32 %v1118_v28, %v3520_v25  ;;  %v2156_v4 = vadd.s32 %v2154_v19, %v2148_v12  ;;  %v2158_v11 = vsel %vm2157_vm11, 1, %v3056_v31 }
 0x1bb   : > { %v1650_v27 = vadd.f32 %v1620_v1, %v1482_v57  ;;  %v2282_v34 = vsel %vm4127_vm10, %v2264_v52, %v4106_v38  ;;  %v2152_v18 = vshrl.u32 %v2147_v50, 16  ;;  %vm2211_vm1 = vcmp.ne.s32.totalorder %v2107_v45, 0 }
 0x1bc   : > { %v2160_v1 = vadd.s32 %v2158_v11, %v2156_v4  ;;  %v2172_v53 = vshrl.u32 %v4123_v17, 16  ;;  %vm2229_vm12 = vcmp.lt.s32.totalorder %v2107_v45, 0  ;;  %v2135_v26 = vmul.u32 18, %v2134_v59 }
 0x1bd   : > { %v2353_v15 = vsel %vm4117_vm8, %v1650_v27, 0.0  ;;  %v2175_v7 = vmul.u32 58254, %v2171_v39  ;;  %v2174_v33 = vmul.u32 14564, %v2171_v39  ;;  %vm2300_vm13 = vcmp.lt.s32.totalorder %v2282_v34, 16  ;;  %vm4143_vm14 = vmand %vm2229_vm12, %vm2211_vm1 }
 0x1be   : > { %v2371_v41 = vadd.f32 %v2370_v42, %v2353_v15  ;;  %v2398_v36 = vmul.f32 %v2353_v15, %v2353_v15  ;;  %v1287_v35 = vpop.f32.mrf.mxu2  ;;  %v2161_v22 = vadd.s32 %v2160_v1, %v2150_v49  ;;  %v2176_v23 = vmul.u32 14564, %v2172_v53 }
 0x1bf   : > { %v1315_v29 = vadd.f32 %v1287_v35, %v1146_v55  ;;  %v2265_v37 = vadd.s32 18, %v2107_v45  ;;  %v2177_v56 = vmul.u32 58254, %v2172_v53  ;;  %v2178_v47 = vshll.u32 %v2175_v7, 16 }
 0x1c0   : > { %v2415_v25 = vadd.f32 %v2414_v14, %v2398_v36  ;;  %v1121_v63 = vpop.f32.mrf.mxu1  ;;  %v2162_v6 = vadd.s32 %v2161_v22, %v2152_v18  ;;  %v2136_v8 = vsub.s32 %v4054_v5, %v2135_v26  ;;  %v2180_v42 = vshll.u32 %v2176_v23, 16  ;;  %v1461_v52 = vpop.f32.mrf.mxu3 }
 0x1c1   : > { %v1483_v0 = vadd.f32 %v1455_v30, %v1315_v29  ;;  %v1626_v62 = vpop.f32.mrf.mxu0  ;;  %v1147_v3 = vadd.f32 %v1121_v63, %v3542_v60  ;;  %vm2182_vm15 = vc.u32 %v2174_v33, %v2178_v47  ;;  %v2184_v58 = vadd.s32 %v2178_v47, %v2174_v33 }
 0x1c2   : > { %v2163_v30 = vshrl.u32 %v2162_v6, 4  ;;  %v2183_v44 = vsel %vm2182_vm15, 1, %v3056_v31  ;;  %v2283_v28 = vsel %vm4143_vm14, %v2265_v37, %v2107_v45  ;;  %vm2212_vm0 = vcmp.ne.s32.totalorder %v2136_v8, 0 }
 0x1c3   : > { %v1651_v38 = vadd.f32 %v1623_v32, %v1483_v0  ;;  %v2185_v16 = vadd.s32 %v2183_v44, %v2177_v56  ;;  %v2179_v5 = vshrl.u32 %v2175_v7, 16  ;;  %vm2186_vm2 = vc.u32 %v2184_v58, %v2180_v42 }
 0x1c4   : > { %vm2230_vm3 = vcmp.lt.s32.totalorder %v2136_v8, 0  ;;  %v2164_v24 = vmul.u32 18, %v2163_v30  ;;  %v2187_v32 = vsel %vm2186_vm2, 1, %v3056_v31  ;;  %vm2301_vm4 = vcmp.lt.s32.totalorder %v2283_v28, 16 }
 0x1c5   : > { %v2354_v9 = vsel %vm2300_vm13, %v1651_v38, 0.0  ;;  %v2181_v12 = vshrl.u32 %v2176_v23, 16  ;;  %v2189_v43 = vadd.s32 %v2187_v32, %v2185_v16  ;;  %v2266_v27 = vadd.s32 18, %v2136_v8  ;;  %vm4153_vm5 = vmand %vm2230_vm3, %vm2212_vm0 }
 0x1c6   : > { %v2372_v54 = vadd.f32 %v2371_v41, %v2354_v9  ;;  %v2399_v50 = vmul.f32 %v2354_v9, %v2354_v9  ;;  %v1290_v13 = vpop.f32.mrf.mxu2  ;;  %v2165_v39 = vsub.s32 %v4076_v20, %v2164_v24 }
 0x1c7   : > { %v1316_v14 = vadd.f32 %v1290_v13, %v1147_v3  ;;  %v2190_v49 = vadd.s32 %v2189_v43, %v2179_v5  ;;  %v2284_v41 = vsel %vm4153_vm5, %v2266_v27, %v2136_v8 }
 0x1c8   : > { %v2416_v2 = vadd.f32 %v2415_v25, %v2399_v50  ;;  %v1124_v57 = vpop.f32.mrf.mxu1  ;;  %vm2213_vm6 = vcmp.ne.s32.totalorder %v2165_v39, 0  ;;  %vm2231_vm7 = vcmp.lt.s32.totalorder %v2165_v39, 0  ;;  %vm2302_vm8 = vcmp.lt.s32.totalorder %v2284_v41, 16  ;;  %v1464_v53 = vpop.f32.mrf.mxu3 }
 0x1c9   : > { %v1484_v60 = vadd.f32 %v1458_v10, %v1316_v14  ;;  %v1629_v51 = vpop.f32.mrf.mxu0  ;;  %v1148_v59 = vadd.f32 %v1124_v57, %v3567_v21  ;;  %v2191_v4 = vadd.s32 %v2190_v49, %v2181_v12  ;;  %v2267_v1 = vadd.s32 18, %v2165_v39  ;;  %vm2249_vm9 = vmand %vm2231_vm7, %vm2213_vm6 }
 0x1cb   : > { %v1652_v61 = vadd.f32 %v1626_v62, %v1484_v60  ;;  %v2192_v34 = vshrl.u32 %v2191_v4, 4  ;;  %v2285_v33 = vsel %vm2249_vm9, %v2267_v1, %v2165_v39 }
 0x1cc   : > { %vm2303_vm1 = vcmp.lt.s32.totalorder %v2285_v33, 16 }
 0x1cd   : > { %v2355_v19 = vsel %vm2301_vm4, %v1652_v61, 0.0  ;;  %v2193_v29 = vmul.u32 18, %v2192_v34  ;;  %v2385_v61 = vld [vmem:[#allocation4] sm:$0x1] }
 0x1ce   : > { %v2373_v55 = vadd.f32 %v2372_v54, %v2355_v19  ;;  %v2400_v15 = vmul.f32 %v2355_v19, %v2355_v19  ;;  %v1293_v31 = vpop.f32.mrf.mxu2 }
 0x1cf   : > { %v1317_v11 = vadd.f32 %v1293_v31, %v1148_v59  ;;  %v2194_v63 = vsub.s32 %v4123_v17, %v2193_v29 }
 0x1d0   : > { %v2417_v36 = vadd.f32 %v2416_v2, %v2400_v15  ;;  %v1127_v35 = vpop.f32.mrf.mxu1  ;;  %v1467_v8 = vpop.f32.mrf.mxu3 }
 0x1d1   : > { %v1485_v18 = vadd.f32 %v1461_v52, %v1317_v11  ;;  %v1149_v20 = vadd.f32 %v1127_v35, %v3601_v48  ;;  %v1632_v0 = vpop.f32.mrf.mxu0  ;;  %vm2214_vm10 = vcmp.ne.s32.totalorder %v2194_v63, 0  ;;  %vm2232_vm11 = vcmp.lt.s32.totalorder %v2194_v63, 0  ;;  %v2359_v52 = vld [vmem:[#allocation2] sm:$0x1] }
 0x1d2   : > { %v2268_v6 = vadd.s32 18, %v2194_v63  ;;  %vm2250_vm12 = vmand %vm2232_vm11, %vm2214_vm10 }
 0x1d3   : > { %v1653_v21 = vadd.f32 %v1629_v51, %v1485_v18 }
 0x1d4   : > { %v2286_v3 = vsel %vm2250_vm12, %v2268_v6, %v2194_v63 }
 0x1d5   : > { %v2356_v25 = vsel %vm2302_vm8, %v1653_v21, 0.0  ;;  %vm2304_vm13 = vcmp.lt.s32.totalorder %v2286_v3, 16 }
 0x1d6   : > { %v2374_v10 = vadd.f32 %v2373_v55, %v2356_v25  ;;  %v2401_v26 = vmul.f32 %v2356_v25, %v2356_v25  ;;  %v1296_v7 = vpop.f32.mrf.mxu2 }
 0x1d7   : > { %v1318_v22 = vadd.f32 %v1296_v7, %v1149_v20 }
 0x1d8   : > { %v2418_v23 = vadd.f32 %v2417_v36, %v2401_v26  ;;  %v1130_v37 = vpop.f32.mrf.mxu1 }
 0x1d9   : > { %v1486_v62 = vadd.f32 %v1464_v53, %v1318_v22  ;;  %v1150_v48 = vadd.f32 %v1130_v37, %v3652_v40  ;;  %v1635_v30 = vpop.f32.mrf.mxu0 }
 0x1db   : > { %v1654_v38 = vadd.f32 %v1632_v0, %v1486_v62 }
 0x1dd   : > { %v2357_v56 = vsel %vm2303_vm1, %v1654_v38, 0.0 }
 0x1de   : > { %v2375_v47 = vadd.f32 %v2374_v10, %v2357_v56  ;;  %v2402_v17 = vmul.f32 %v2357_v56, %v2357_v56  ;;  %v1299_v46 = vpop.f32.mrf.mxu2 }
 0x1df   : > { %v1319_v42 = vadd.f32 %v1299_v46, %v1150_v48 }
 0x1e0   : > { %v2419_v9 = vadd.f32 %v2418_v23, %v2402_v17 }
 0x1e1   : > { %v1487_v54 = vadd.f32 %v1467_v8, %v1319_v42 }
 0x1e3   : > { %v1655_v50 = vadd.f32 %v1635_v30, %v1487_v54 }
 0x1e5   : > { %v2358_v13 = vsel %vm2304_vm13, %v1655_v50, 0.0 }
 0x1e6   : > { %v2376_v44 = vadd.f32 %v2375_v47, %v2358_v13  ;;  %v2403_v58 = vmul.f32 %v2358_v13, %v2358_v13 }
 0x1e8   : > { %v2377_v14 = vrot.slane %v2376_v44, 4  ;;  %v2420_v28 = vadd.f32 %v2419_v9, %v2403_v58 }
 0x1ea   : > { %v2378_v16 = vadd.f32 %v2377_v14, %v2376_v44  ;;  %v2421_v40 = vrot.slane %v2420_v28, 4 }
 0x1ec   : > { %v2379_v2 = vrot.slane %v2378_v16, 2  ;;  %v2422_v57 = vadd.f32 %v2421_v40, %v2420_v28 }
 0x1ee   : > { %v2380_v5 = vadd.f32 %v2379_v2, %v2378_v16  ;;  %v2423_v60 = vrot.slane %v2422_v57, 2 }
 0x1f0   : > { %v2381_v24 = vrot.slane %v2380_v5, 1  ;;  %v2424_v32 = vadd.f32 %v2423_v60, %v2422_v57 }
 0x1f2   : > { %v2382_v12 = vadd.f32 %v2381_v24, %v2380_v5  ;;  %v2425_v43 = vrot.slane %v2424_v32, 1 }
 0x1f4   : > { %v2383_v27 = vadd.f32 %v2382_v12, %v2359_v52  ;;  %v2426_v51 = vadd.f32 %v2425_v43, %v2424_v32 }
 0x1f6   : > { %2384 = vst [vmem:[#allocation2] sm:$0x1] %v2383_v27  ;;  %v2427_v45 = vadd.f32 %v2426_v51, %v2385_v61 }
 0x1f7   : > { %2896 = dma.vmem_to_hbm [thread:$0]  (%p4169_p9), %s2436_s24, 16, %s2438_s27, [#allocation3]  }
 0x1f8   : > { %2428 = vst [vmem:[#allocation4] sm:$0x1] %v2427_v45 }
 0x1f9   : > { %2898 = dma.vmem_to_hbm [thread:$0]  (%p4169_p9), %s2448_s30, 16, %s2450_s6, [#allocation5]  }
 0x1fa   : > { %3028 = dma.done.wait (%p4169_p9), [#allocation3], 16  }
 0x1fb   : > { %3030 = vsyncadd (%p4169_p9), [#allocation3], 4294967280 }
 0x1fc   : > { %3032 = dma.done.wait (%p4169_p9), [#allocation5], 16  }
 0x1fd   : > { %3034 = vsyncadd (%p4169_p9), [#allocation5], 4294967280 }
 0x1fe PF: > { %s16_s16 = sadd.s32 1, %s3053_s16   ;;  %s4266_s12 = smov %s3045_s14 }
 0x1ff   : > { %p13_p10 = scmp.ge.s32.totalorder %s16_s16, 6   ;;  %s4267_s13 = smov %s3049_s15 }
 0x200   : > { %s4268_s14 = smov %s4271_s18  ;;  %s4269_s15 = smov %s4275_s19 }
 0x201   :  { %15 = sbr.rel (!%p13_p10) target bundleno = 4 (0x4), region = 84 }
 0x206   :  { %2468 = vsyncpa [#allocation3], 1 }
 0x207   :  { %2470 = vsyncpa [#allocation3 + $0x1], 1 }
 0x208   :  { %2471 = vsyncpa [#allocation5], 1 }

</bundles_post_ra>
